<compile_context>
chip_gen: v6e
topology: v6e:2x2x1
jax: 0.10.0
libtpu: 0.0.40
codegen_flags: <defaults>
</compile_context>

<pallas_src>
import jax
import jax.numpy as jnp
from jax.experimental import pallas as pl
from jax.experimental.pallas import tpu as pltpu


def lstm_dqn_kernel(
    x_ref,        # (T, Bt, I)   time-major input tile, f32
    ln_g_ref,     # (1, I)       LayerNorm weight
    ln_b_ref,     # (1, I)       LayerNorm bias
    wih_ref,      # (I, 4H)      bf16, gate columns ordered (i, f, o, g)
    whh_ref,      # (H, 4H)      bf16, gate columns ordered (i, f, o, g)
    lstm_b_ref,   # (1, 4H)      f32, (b_ih + b_hh), reordered (i, f, o, g)
    w1_ref,       # (H, H)       bf16
    b1_ref,       # (1, H)       f32
    w2_ref,       # (H, H//2)    bf16
    b2_ref,       # (1, H//2)    f32
    w3_ref,       # (H//2, Opad) bf16, zero-padded to lane-dense Opad
    b3_ref,       # (1, Opad)    f32, zero-padded
    out_ref,      # (Bt, Opad)   f32
    gx_ref,       # VMEM scratch (T, Bt, 4H) f32: input projection + bias, time-major
):
    T, B, I = x_ref.shape
    H = whh_ref.shape[0]
    H4 = 4 * H

    # ---- Fused LayerNorm (eps=1e-5) + input projection as ONE big matmul over the slab.
    x = x_ref[...].astype(jnp.float32).reshape(T * B, I)          # (T*Bt, I)
    mu = jnp.mean(x, axis=-1, keepdims=True)
    var = jnp.mean((x - mu) ** 2, axis=-1, keepdims=True)
    xn = (x - mu) * jax.lax.rsqrt(var + 1e-5)
    xn = xn * ln_g_ref[...] + ln_b_ref[...]
    gx = jnp.dot(xn.astype(jnp.bfloat16), wih_ref[...],
                 preferred_element_type=jnp.float32) + lstm_b_ref[...]   # (T*Bt, 4H)
    gx_ref[...] = gx.reshape(T, B, H4)

    # ---- LSTM recurrence. Gate order (i, f, o, g): one sigmoid over 3H lanes, one tanh.
    # h carried in bf16 (it is only ever consumed by the MXU in bf16); c stays f32.
    whh = whh_ref[...]

    def lstm_step(t, carry):
        h, c = carry                                              # h: (Bt,H) bf16, c: (Bt,H) f32
        gates = gx_ref[t] + jnp.dot(h, whh, preferred_element_type=jnp.float32)  # (Bt, 4H)
        ifo = jax.nn.sigmoid(gates[:, : 3 * H])                   # (i, f, o) in one pass
        g_g = jnp.tanh(gates[:, 3 * H:])
        c = ifo[:, H:2 * H] * c + ifo[:, :H] * g_g
        h = (ifo[:, 2 * H:] * jnp.tanh(c)).astype(jnp.bfloat16)
        return (h, c)

    h0 = jnp.zeros((B, H), jnp.bfloat16)
    c0 = jnp.zeros((B, H), jnp.float32)
    unroll = True if T <= 16 else 4
    h_last, _ = jax.lax.fori_loop(0, T, lstm_step, (h0, c0), unroll=unroll)

    # ---- MLP head: fc1 -> ReLU -> fc2 -> ReLU -> fc3 (dropout = identity in eval mode).
    h1 = jnp.maximum(
        jnp.dot(h_last, w1_ref[...], preferred_element_type=jnp.float32) + b1_ref[...], 0.0)
    h2 = jnp.maximum(
        jnp.dot(h1.astype(jnp.bfloat16), w2_ref[...],
                preferred_element_type=jnp.float32) + b2_ref[...], 0.0)
    out = jnp.dot(h2.astype(jnp.bfloat16), w3_ref[...],
                  preferred_element_type=jnp.float32) + b3_ref[...]
    out_ref[...] = out.astype(out_ref.dtype)


def _round_up(n, m):
    return ((n + m - 1) // m) * m


def _pick_batch_tile(b_pad, t, i, h4, o_pad, weight_bytes, budget=48 * 1024 * 1024):
    """Largest sublane-aligned batch tile whose VMEM footprint fits the budget.

    Footprint per grid step: gx scratch (f32) + double-buffered x tile + double-buffered
    out tile + double-buffered resident weights.  Budget of 48 MiB fits v7x's 64 MiB VMEM
    with headroom (and trivially fits v5e/v6e's 128 MiB).  Prefer >= 2 grid steps when
    B >= 16 so both v7x TensorCores get work (batch is the only parallel axis here).
    """
    cap = b_pad // 2 if b_pad >= 16 else b_pad
    for cand in (512, 256, 128, 64, 32, 16, 8):
        if cand > cap or b_pad % cand != 0:
            continue
        fp = (t * cand * h4 * 4          # gx scratch
              + 2 * t * cand * i * 4     # double-buffered x tile
              + 2 * cand * o_pad * 4     # double-buffered out tile
              + 2 * weight_bytes)        # double-buffered resident weights
        if fp <= budget:
            return cand
    return 8


def lstm_dqn_forward(x, params, *, b_tile=None):
    """x: (B, T, I) float32, batch-first (matches nn.LSTM(batch_first=True)). Returns (B, O)."""
    B, T, I = x.shape
    H = params["whh_t"].shape[0]
    H4 = 4 * H
    H2 = params["fc2_wt"].shape[1]
    O = params["fc3_b"].shape[-1]
    O_pad = _round_up(O, 128)

    # Lane-dense output: zero-pad fc3 to a multiple of 128 output columns.
    if O_pad != O:
        w3 = jnp.pad(params["fc3_wt"], ((0, 0), (0, O_pad - O)))
        b3 = jnp.pad(params["fc3_b"], ((0, 0), (0, O_pad - O)))
    else:
        w3, b3 = params["fc3_wt"], params["fc3_b"]

    # Sublane-align the batch (pad to a multiple of 8; demo B=2 -> 8).
    B_pad = _round_up(max(B, 8), 8)
    x_in = x if B_pad == B else jnp.pad(x, ((0, B_pad - B), (0, 0), (0, 0)))

    weight_args = (params["ln_g"], params["ln_b"], params["wih_t"], params["whh_t"],
                   params["lstm_b"], params["fc1_wt"], params["fc1_b"], params["fc2_wt"],
                   params["fc2_b"], w3, b3)
    weight_bytes = sum(int(v.size) * v.dtype.itemsize for v in weight_args)

    if b_tile is None:
        b_tile = _pick_batch_tile(B_pad, T, I, H4, O_pad, weight_bytes)
    assert B_pad % b_tile == 0 and b_tile % 8 == 0
    n_b = B_pad // b_tile

    # Time-major layout (done in XLA, outside the kernel) so per-timestep reads are
    # contiguous (Bt, I) tiles.  TODO(synk): for very large B*T*I this swapaxes is an extra
    # HBM round trip; fuse upstream or transpose in-kernel if it ever shows up in profiles.
    x_tm = jnp.swapaxes(x_in, 0, 1)                               # (T, B_pad, I)

    const2 = lambda j: (0, 0)

    in_specs = [
        pl.BlockSpec((T, b_tile, I), lambda j: (0, j, 0)),        # x tile, gridded over batch
        pl.BlockSpec((1, I), const2),                             # ln_g (resident)
        pl.BlockSpec((1, I), const2),                             # ln_b
        pl.BlockSpec((I, H4), const2),                            # wih
        pl.BlockSpec((H, H4), const2),                            # whh
        pl.BlockSpec((1, H4), const2),                            # lstm bias
        pl.BlockSpec((H, H), const2),                             # fc1 w
        pl.BlockSpec((1, H), const2),                             # fc1 b
        pl.BlockSpec((H, H2), const2),                            # fc2 w
        pl.BlockSpec((1, H2), const2),                            # fc2 b
        pl.BlockSpec((H2, O_pad), const2),                        # fc3 w (lane-padded)
        pl.BlockSpec((1, O_pad), const2),                         # fc3 b (lane-padded)
    ]
    out_specs = pl.BlockSpec((b_tile, O_pad), lambda j: (j, 0))

    # Explicit scoped-VMEM limit, sized from the actual buffers (never below 32 MiB default).
    per_step_bytes = (T * b_tile * H4 * 4            # gx scratch
                      + 2 * T * b_tile * I * 4       # double-buffered x tile
                      + 2 * b_tile * O_pad * 4       # double-buffered out tile
                      + 2 * weight_bytes)
    vmem_limit = int(min(max(2 * per_step_bytes + (4 << 20), 32 << 20), 128 << 20))

    flops = (2 * B_pad * T * I * H4                  # input projection (one fused matmul)
             + 2 * B_pad * T * H * H4                # recurrent projection
             + 2 * B_pad * (H * H + H * H2 + H2 * O_pad))
    # sigmoid ~ 2 EUP ops/elem (exp + recip); 3H sigmoid + 2H tanh per (b, t) + LN rsqrt.
    transcendentals = B_pad * T * (8 * H + 1)
    bytes_accessed = (int(x_tm.size) * x_tm.dtype.itemsize
                      + B_pad * O_pad * 4
                      + weight_bytes)

    out = pl.pallas_call(
        lstm_dqn_kernel,
        out_shape=jax.ShapeDtypeStruct((B_pad, O_pad), jnp.float32),
        grid=(n_b,),
        in_specs=in_specs,
        out_specs=out_specs,
        scratch_shapes=[pltpu.VMEM((T, b_tile, H4), jnp.float32)],
        compiler_params=pltpu.CompilerParams(
            dimension_semantics=("parallel",),
            vmem_limit_bytes=vmem_limit,
        ),
        cost_estimate=pl.CostEstimate(
            flops=flops,
            transcendentals=transcendentals,
            bytes_accessed=bytes_accessed,
        ),
    )(x_tm, *weight_args)

    return out[:B, :O]


def init_params(key, input_size, hidden_size, output_size):
    """PyTorch-style uniform init. Host-side packing for the kernel:
    gate blocks reordered (i,f,g,o) -> (i,f,o,g), weights transposed for x @ W,
    matmul weights cast to bf16 (biases / LN params stay f32)."""
    I, H, O = input_size, hidden_size, output_size
    H2 = H // 2
    ks = jax.random.split(key, 10)

    def u(k, shape, bound):
        return jax.random.uniform(k, shape, jnp.float32, -bound, bound)

    k_lstm = 1.0 / jnp.sqrt(H)
    w_ih = u(ks[0], (4 * H, I), k_lstm)       # PyTorch layout (4H, I), rows i,f,g,o
    w_hh = u(ks[1], (4 * H, H), k_lstm)
    b_ih = u(ks[2], (4 * H,), k_lstm)
    b_hh = u(ks[3], (4 * H,), k_lstm)

    def reorder_ifgo_to_ifog(w):
        i, f, g, o = jnp.split(w, 4, axis=0)
        return jnp.concatenate([i, f, o, g], axis=0)

    w_ih = reorder_ifgo_to_ifog(w_ih)
    w_hh = reorder_ifgo_to_ifog(w_hh)
    lstm_b = reorder_ifgo_to_ifog(b_ih + b_hh)

    k1 = 1.0 / jnp.sqrt(H)
    k2 = 1.0 / jnp.sqrt(H)
    k3 = 1.0 / jnp.sqrt(H2)
    fc1_w = u(ks[4], (H, H), k1)
    fc1_b = u(ks[5], (H,), k1)
    fc2_w = u(ks[6], (H2, H), k2)
    fc2_b = u(ks[7], (H2,), k2)
    fc3_w = u(ks[8], (O, H2), k3)
    fc3_b = u(ks[9], (O,), k3)

    return {
        "ln_g": jnp.ones((1, I), jnp.float32),         # LayerNorm default weight=1
        "ln_b": jnp.zeros((1, I), jnp.float32),        # LayerNorm default bias=0
        "wih_t": w_ih.T.astype(jnp.bfloat16),          # (I, 4H), gate cols i,f,o,g
        "whh_t": w_hh.T.astype(jnp.bfloat16),          # (H, 4H)
        "lstm_b": lstm_b.reshape(1, 4 * H),            # f32
        "fc1_wt": fc1_w.T.astype(jnp.bfloat16), "fc1_b": fc1_b.reshape(1, H),
        "fc2_wt": fc2_w.T.astype(jnp.bfloat16), "fc2_b": fc2_b.reshape(1, H2),
        "fc3_wt": fc3_w.T.astype(jnp.bfloat16), "fc3_b": fc3_b.reshape(1, O),
    }


if __name__ == "__main__":
    B, T, INPUT, HIDDEN, OUT = 2, 8, 16, 32, 5
    key = jax.random.PRNGKey(0)
    k_x, k_p = jax.random.split(key)
    x = jax.random.normal(k_x, (B, T, INPUT), jnp.float32)
    params = init_params(k_p, INPUT, HIDDEN, OUT)

    y = lstm_dqn_forward(x, params)
    jax.block_until_ready(y)
    assert y.shape == (B, OUT)
    assert bool(jnp.all(jnp.isfinite(y)))
    print("KERNEL_OK")
</pallas_src>

<mosaic_0001>
module attributes {stable_mosaic.version = 11 : i64} {
  func.func @lstm_dqn_kernel(%arg0: i32, %arg1: memref<8x8x16xf32, #tpu.memory_space<vmem>>, %arg2: memref<1x16xf32, #tpu.memory_space<vmem>>, %arg3: memref<1x16xf32, #tpu.memory_space<vmem>>, %arg4: memref<16x128xbf16, #tpu.memory_space<vmem>>, %arg5: memref<32x128xbf16, #tpu.memory_space<vmem>>, %arg6: memref<1x128xf32, #tpu.memory_space<vmem>>, %arg7: memref<32x32xbf16, #tpu.memory_space<vmem>>, %arg8: memref<1x32xf32, #tpu.memory_space<vmem>>, %arg9: memref<32x16xbf16, #tpu.memory_space<vmem>>, %arg10: memref<1x16xf32, #tpu.memory_space<vmem>>, %arg11: memref<16x128xbf16, #tpu.memory_space<vmem>>, %arg12: memref<1x128xf32, #tpu.memory_space<vmem>>, %arg13: memref<8x128xf32, #tpu.memory_space<vmem>>, %arg14: memref<8x8x128xf32, #tpu.memory_space<vmem>>) attributes {dimension_semantics = [#tpu.dimension_semantics<parallel>], iteration_bounds = array<i64: 1>, scalar_prefetch = 0 : i64, scratch_operands = 1 : i64, tpu.core_type = #tpu.core_type<tc>, window_params = [{transform_indices = @transform_0, window_bounds = array<i64: 8, 8, 16>}, {pipeline_mode = #tpu.pipeline_mode<synchronous>, transform_indices = @transform_1, window_bounds = array<i64: 1, 16>}, {pipeline_mode = #tpu.pipeline_mode<synchronous>, transform_indices = @transform_2, window_bounds = array<i64: 1, 16>}, {pipeline_mode = #tpu.pipeline_mode<synchronous>, transform_indices = @transform_3, window_bounds = array<i64: 16, 128>}, {pipeline_mode = #tpu.pipeline_mode<synchronous>, transform_indices = @transform_4, window_bounds = array<i64: 32, 128>}, {pipeline_mode = #tpu.pipeline_mode<synchronous>, transform_indices = @transform_5, window_bounds = array<i64: 1, 128>}, {pipeline_mode = #tpu.pipeline_mode<synchronous>, transform_indices = @transform_6, window_bounds = array<i64: 32, 32>}, {pipeline_mode = #tpu.pipeline_mode<synchronous>, transform_indices = @transform_7, window_bounds = array<i64: 1, 32>}, {pipeline_mode = #tpu.pipeline_mode<synchronous>, transform_indices = @transform_8, window_bounds = array<i64: 32, 16>}, {pipeline_mode = #tpu.pipeline_mode<synchronous>, transform_indices = @transform_9, window_bounds = array<i64: 1, 16>}, {pipeline_mode = #tpu.pipeline_mode<synchronous>, transform_indices = @transform_10, window_bounds = array<i64: 16, 128>}, {pipeline_mode = #tpu.pipeline_mode<synchronous>, transform_indices = @transform_11, window_bounds = array<i64: 1, 128>}, {transform_indices = @transform_12, window_bounds = array<i64: 8, 128>}]} {
    %c0 = arith.constant 0 : index
    %c0_0 = arith.constant 0 : index
    %c0_1 = arith.constant 0 : index
    %0 = vector.load %arg1[%c0, %c0_0, %c0_1] : memref<8x8x16xf32, #tpu.memory_space<vmem>>, vector<8x8x16xf32>
    %1 = vector.shape_cast %0 : vector<8x8x16xf32> to vector<64x16xf32>
    %cst = arith.constant dense<0.000000e+00> : vector<64xf32>
    %2 = vector.multi_reduction <add>, %1, %cst [1] : vector<64x16xf32> to vector<64xf32>
    %3 = vector.shape_cast %2 : vector<64xf32> to vector<64x1xf32>
    %cst_2 = arith.constant 1.600000e+01 : f32
    %4 = vector.broadcast %cst_2 : f32 to vector<64x1xf32>
    %5 = arith.divf %3, %4 : vector<64x1xf32>
    %6 = vector.broadcast %5 : vector<64x1xf32> to vector<64x16xf32>
    %7 = arith.subf %1, %6 : vector<64x16xf32>
    %8 = arith.mulf %7, %7 : vector<64x16xf32>
    %cst_3 = arith.constant dense<0.000000e+00> : vector<64xf32>
    %9 = vector.multi_reduction <add>, %8, %cst_3 [1] : vector<64x16xf32> to vector<64xf32>
    %10 = vector.shape_cast %9 : vector<64xf32> to vector<64x1xf32>
    %cst_4 = arith.constant 1.600000e+01 : f32
    %11 = vector.broadcast %cst_4 : f32 to vector<64x1xf32>
    %12 = arith.divf %10, %11 : vector<64x1xf32>
    %13 = vector.broadcast %5 : vector<64x1xf32> to vector<64x16xf32>
    %14 = arith.subf %1, %13 : vector<64x16xf32>
    %cst_5 = arith.constant 9.99999974E-6 : f32
    %15 = vector.broadcast %cst_5 : f32 to vector<64x1xf32>
    %16 = arith.addf %12, %15 : vector<64x1xf32>
    %17 = math.rsqrt %16 : vector<64x1xf32>
    %18 = vector.broadcast %17 : vector<64x1xf32> to vector<64x16xf32>
    %19 = arith.mulf %14, %18 : vector<64x16xf32>
    %c0_6 = arith.constant 0 : index
    %c0_7 = arith.constant 0 : index
    %20 = vector.load %arg2[%c0_6, %c0_7] : memref<1x16xf32, #tpu.memory_space<vmem>>, vector<1x16xf32>
    %21 = vector.broadcast %20 : vector<1x16xf32> to vector<64x16xf32>
    %22 = arith.mulf %19, %21 : vector<64x16xf32>
    %c0_8 = arith.constant 0 : index
    %c0_9 = arith.constant 0 : index
    %23 = vector.load %arg3[%c0_8, %c0_9] : memref<1x16xf32, #tpu.memory_space<vmem>>, vector<1x16xf32>
    %24 = vector.broadcast %23 : vector<1x16xf32> to vector<64x16xf32>
    %25 = arith.addf %22, %24 : vector<64x16xf32>
    %26 = arith.truncf %25 : vector<64x16xf32> to vector<64x16xbf16>
    %c0_10 = arith.constant 0 : index
    %c0_11 = arith.constant 0 : index
    %27 = vector.load %arg4[%c0_10, %c0_11] : memref<16x128xbf16, #tpu.memory_space<vmem>>, vector<16x128xbf16>
    %cst_12 = arith.constant dense<0.000000e+00> : vector<64x128xf32>
    %28 = tpu.matmul %26, %27, %cst_12 {dimension_numbers = #tpu.dot_dimension_numbers<[1], [0], [0], [1], [0, 0, 1, 1], [], []>} : vector<64x16xbf16>, vector<16x128xbf16>, vector<64x128xf32> -> vector<64x128xf32>
    %c0_13 = arith.constant 0 : index
    %c0_14 = arith.constant 0 : index
    %29 = vector.load %arg6[%c0_13, %c0_14] : memref<1x128xf32, #tpu.memory_space<vmem>>, vector<1x128xf32>
    %30 = vector.broadcast %29 : vector<1x128xf32> to vector<64x128xf32>
    %31 = arith.addf %28, %30 : vector<64x128xf32>
    %32 = vector.shape_cast %31 : vector<64x128xf32> to vector<8x8x128xf32>
    %c0_15 = arith.constant 0 : index
    %c0_16 = arith.constant 0 : index
    %c0_17 = arith.constant 0 : index
    %33 = vector.load %arg14[%c0_15, %c0_16, %c0_17] : memref<8x8x128xf32, #tpu.memory_space<vmem>>, vector<8x8x128xf32>
    tpu.vector_store %arg14[%c0_15, %c0_16, %c0_17], %32 {strides = array<i32>} : memref<8x8x128xf32, #tpu.memory_space<vmem>>, vector<8x8x128xf32>,
    %c0_18 = arith.constant 0 : index
    %c0_19 = arith.constant 0 : index
    %34 = vector.load %arg5[%c0_18, %c0_19] : memref<32x128xbf16, #tpu.memory_space<vmem>>, vector<32x128xbf16>
    %cst_20 = arith.constant 0.000000e+00 : bf16
    %35 = vector.broadcast %cst_20 : bf16 to vector<8x32xbf16>
    %cst_21 = arith.constant 0.000000e+00 : f32
    %36 = vector.broadcast %cst_21 : f32 to vector<8x32xf32>
    %c0_i32 = arith.constant 0 : i32
    %37 = arith.index_cast %c0_i32 : i32 to index
    %c0_22 = arith.constant 0 : index
    %c0_23 = arith.constant 0 : index
    %38 = vector.load %arg14[%37, %c0_22, %c0_23] : memref<8x8x128xf32, #tpu.memory_space<vmem>>, vector<1x8x128xf32>
    %39 = vector.shape_cast %38 : vector<1x8x128xf32> to vector<8x128xf32>
    %cst_24 = arith.constant dense<0.000000e+00> : vector<8x128xf32>
    %40 = tpu.matmul %35, %34, %cst_24 {dimension_numbers = #tpu.dot_dimension_numbers<[1], [0], [0], [1], [0, 0, 1, 1], [], []>} : vector<8x32xbf16>, vector<32x128xbf16>, vector<8x128xf32> -> vector<8x128xf32>
    %41 = arith.addf %39, %40 : vector<8x128xf32>
    %42 = vector.extract_strided_slice %41 {offsets = [0, 0], sizes = [8, 96], strides = [1, 1]} : vector<8x128xf32> to vector<8x96xf32>
    %43 = arith.negf %42 : vector<8x96xf32>
    %44 = math.exp %43 : vector<8x96xf32>
    %cst_25 = arith.constant 1.000000e+00 : f32
    %45 = vector.broadcast %cst_25 : f32 to vector<8x96xf32>
    %46 = arith.addf %45, %44 : vector<8x96xf32>
    %47 = arith.divf %45, %46 : vector<8x96xf32>
    %48 = vector.extract_strided_slice %41 {offsets = [0, 96], sizes = [8, 32], strides = [1, 1]} : vector<8x128xf32> to vector<8x32xf32>
    %49 = math.tanh %48 : vector<8x32xf32>
    %50 = vector.extract_strided_slice %47 {offsets = [0, 32], sizes = [8, 32], strides = [1, 1]} : vector<8x96xf32> to vector<8x32xf32>
    %51 = arith.mulf %50, %36 : vector<8x32xf32>
    %52 = vector.extract_strided_slice %47 {offsets = [0, 0], sizes = [8, 32], strides = [1, 1]} : vector<8x96xf32> to vector<8x32xf32>
    %53 = arith.mulf %52, %49 : vector<8x32xf32>
    %54 = arith.addf %51, %53 : vector<8x32xf32>
    %55 = vector.extract_strided_slice %47 {offsets = [0, 64], sizes = [8, 32], strides = [1, 1]} : vector<8x96xf32> to vector<8x32xf32>
    %56 = math.tanh %54 : vector<8x32xf32>
    %57 = arith.mulf %55, %56 : vector<8x32xf32>
    %58 = arith.truncf %57 : vector<8x32xf32> to vector<8x32xbf16>
    %c1_i32 = arith.constant 1 : i32
    %59 = arith.index_cast %c1_i32 : i32 to index
    %c0_26 = arith.constant 0 : index
    %c0_27 = arith.constant 0 : index
    %60 = vector.load %arg14[%59, %c0_26, %c0_27] : memref<8x8x128xf32, #tpu.memory_space<vmem>>, vector<1x8x128xf32>
    %61 = vector.shape_cast %60 : vector<1x8x128xf32> to vector<8x128xf32>
    %cst_28 = arith.constant dense<0.000000e+00> : vector<8x128xf32>
    %62 = tpu.matmul %58, %34, %cst_28 {dimension_numbers = #tpu.dot_dimension_numbers<[1], [0], [0], [1], [0, 0, 1, 1], [], []>} : vector<8x32xbf16>, vector<32x128xbf16>, vector<8x128xf32> -> vector<8x128xf32>
    %63 = arith.addf %61, %62 : vector<8x128xf32>
    %64 = vector.extract_strided_slice %63 {offsets = [0, 0], sizes = [8, 96], strides = [1, 1]} : vector<8x128xf32> to vector<8x96xf32>
    %65 = arith.negf %64 : vector<8x96xf32>
    %66 = math.exp %65 : vector<8x96xf32>
    %cst_29 = arith.constant 1.000000e+00 : f32
    %67 = vector.broadcast %cst_29 : f32 to vector<8x96xf32>
    %68 = arith.addf %67, %66 : vector<8x96xf32>
    %69 = arith.divf %67, %68 : vector<8x96xf32>
    %70 = vector.extract_strided_slice %63 {offsets = [0, 96], sizes = [8, 32], strides = [1, 1]} : vector<8x128xf32> to vector<8x32xf32>
    %71 = math.tanh %70 : vector<8x32xf32>
    %72 = vector.extract_strided_slice %69 {offsets = [0, 32], sizes = [8, 32], strides = [1, 1]} : vector<8x96xf32> to vector<8x32xf32>
    %73 = arith.mulf %72, %54 : vector<8x32xf32>
    %74 = vector.extract_strided_slice %69 {offsets = [0, 0], sizes = [8, 32], strides = [1, 1]} : vector<8x96xf32> to vector<8x32xf32>
    %75 = arith.mulf %74, %71 : vector<8x32xf32>
    %76 = arith.addf %73, %75 : vector<8x32xf32>
    %77 = vector.extract_strided_slice %69 {offsets = [0, 64], sizes = [8, 32], strides = [1, 1]} : vector<8x96xf32> to vector<8x32xf32>
    %78 = math.tanh %76 : vector<8x32xf32>
    %79 = arith.mulf %77, %78 : vector<8x32xf32>
    %80 = arith.truncf %79 : vector<8x32xf32> to vector<8x32xbf16>
    %c2_i32 = arith.constant 2 : i32
    %81 = arith.index_cast %c2_i32 : i32 to index
    %c0_30 = arith.constant 0 : index
    %c0_31 = arith.constant 0 : index
    %82 = vector.load %arg14[%81, %c0_30, %c0_31] : memref<8x8x128xf32, #tpu.memory_space<vmem>>, vector<1x8x128xf32>
    %83 = vector.shape_cast %82 : vector<1x8x128xf32> to vector<8x128xf32>
    %cst_32 = arith.constant dense<0.000000e+00> : vector<8x128xf32>
    %84 = tpu.matmul %80, %34, %cst_32 {dimension_numbers = #tpu.dot_dimension_numbers<[1], [0], [0], [1], [0, 0, 1, 1], [], []>} : vector<8x32xbf16>, vector<32x128xbf16>, vector<8x128xf32> -> vector<8x128xf32>
    %85 = arith.addf %83, %84 : vector<8x128xf32>
    %86 = vector.extract_strided_slice %85 {offsets = [0, 0], sizes = [8, 96], strides = [1, 1]} : vector<8x128xf32> to vector<8x96xf32>
    %87 = arith.negf %86 : vector<8x96xf32>
    %88 = math.exp %87 : vector<8x96xf32>
    %cst_33 = arith.constant 1.000000e+00 : f32
    %89 = vector.broadcast %cst_33 : f32 to vector<8x96xf32>
    %90 = arith.addf %89, %88 : vector<8x96xf32>
    %91 = arith.divf %89, %90 : vector<8x96xf32>
    %92 = vector.extract_strided_slice %85 {offsets = [0, 96], sizes = [8, 32], strides = [1, 1]} : vector<8x128xf32> to vector<8x32xf32>
    %93 = math.tanh %92 : vector<8x32xf32>
    %94 = vector.extract_strided_slice %91 {offsets = [0, 32], sizes = [8, 32], strides = [1, 1]} : vector<8x96xf32> to vector<8x32xf32>
    %95 = arith.mulf %94, %76 : vector<8x32xf32>
    %96 = vector.extract_strided_slice %91 {offsets = [0, 0], sizes = [8, 32], strides = [1, 1]} : vector<8x96xf32> to vector<8x32xf32>
    %97 = arith.mulf %96, %93 : vector<8x32xf32>
    %98 = arith.addf %95, %97 : vector<8x32xf32>
    %99 = vector.extract_strided_slice %91 {offsets = [0, 64], sizes = [8, 32], strides = [1, 1]} : vector<8x96xf32> to vector<8x32xf32>
    %100 = math.tanh %98 : vector<8x32xf32>
    %101 = arith.mulf %99, %100 : vector<8x32xf32>
    %102 = arith.truncf %101 : vector<8x32xf32> to vector<8x32xbf16>
    %c3_i32 = arith.constant 3 : i32
    %103 = arith.index_cast %c3_i32 : i32 to index
    %c0_34 = arith.constant 0 : index
    %c0_35 = arith.constant 0 : index
    %104 = vector.load %arg14[%103, %c0_34, %c0_35] : memref<8x8x128xf32, #tpu.memory_space<vmem>>, vector<1x8x128xf32>
    %105 = vector.shape_cast %104 : vector<1x8x128xf32> to vector<8x128xf32>
    %cst_36 = arith.constant dense<0.000000e+00> : vector<8x128xf32>
    %106 = tpu.matmul %102, %34, %cst_36 {dimension_numbers = #tpu.dot_dimension_numbers<[1], [0], [0], [1], [0, 0, 1, 1], [], []>} : vector<8x32xbf16>, vector<32x128xbf16>, vector<8x128xf32> -> vector<8x128xf32>
    %107 = arith.addf %105, %106 : vector<8x128xf32>
    %108 = vector.extract_strided_slice %107 {offsets = [0, 0], sizes = [8, 96], strides = [1, 1]} : vector<8x128xf32> to vector<8x96xf32>
    %109 = arith.negf %108 : vector<8x96xf32>
    %110 = math.exp %109 : vector<8x96xf32>
    %cst_37 = arith.constant 1.000000e+00 : f32
    %111 = vector.broadcast %cst_37 : f32 to vector<8x96xf32>
    %112 = arith.addf %111, %110 : vector<8x96xf32>
    %113 = arith.divf %111, %112 : vector<8x96xf32>
    %114 = vector.extract_strided_slice %107 {offsets = [0, 96], sizes = [8, 32], strides = [1, 1]} : vector<8x128xf32> to vector<8x32xf32>
    %115 = math.tanh %114 : vector<8x32xf32>
    %116 = vector.extract_strided_slice %113 {offsets = [0, 32], sizes = [8, 32], strides = [1, 1]} : vector<8x96xf32> to vector<8x32xf32>
    %117 = arith.mulf %116, %98 : vector<8x32xf32>
    %118 = vector.extract_strided_slice %113 {offsets = [0, 0], sizes = [8, 32], strides = [1, 1]} : vector<8x96xf32> to vector<8x32xf32>
    %119 = arith.mulf %118, %115 : vector<8x32xf32>
    %120 = arith.addf %117, %119 : vector<8x32xf32>
    %121 = vector.extract_strided_slice %113 {offsets = [0, 64], sizes = [8, 32], strides = [1, 1]} : vector<8x96xf32> to vector<8x32xf32>
    %122 = math.tanh %120 : vector<8x32xf32>
    %123 = arith.mulf %121, %122 : vector<8x32xf32>
    %124 = arith.truncf %123 : vector<8x32xf32> to vector<8x32xbf16>
    %c4_i32 = arith.constant 4 : i32
    %125 = arith.index_cast %c4_i32 : i32 to index
    %c0_38 = arith.constant 0 : index
    %c0_39 = arith.constant 0 : index
    %126 = vector.load %arg14[%125, %c0_38, %c0_39] : memref<8x8x128xf32, #tpu.memory_space<vmem>>, vector<1x8x128xf32>
    %127 = vector.shape_cast %126 : vector<1x8x128xf32> to vector<8x128xf32>
    %cst_40 = arith.constant dense<0.000000e+00> : vector<8x128xf32>
    %128 = tpu.matmul %124, %34, %cst_40 {dimension_numbers = #tpu.dot_dimension_numbers<[1], [0], [0], [1], [0, 0, 1, 1], [], []>} : vector<8x32xbf16>, vector<32x128xbf16>, vector<8x128xf32> -> vector<8x128xf32>
    %129 = arith.addf %127, %128 : vector<8x128xf32>
    %130 = vector.extract_strided_slice %129 {offsets = [0, 0], sizes = [8, 96], strides = [1, 1]} : vector<8x128xf32> to vector<8x96xf32>
    %131 = arith.negf %130 : vector<8x96xf32>
    %132 = math.exp %131 : vector<8x96xf32>
    %cst_41 = arith.constant 1.000000e+00 : f32
    %133 = vector.broadcast %cst_41 : f32 to vector<8x96xf32>
    %134 = arith.addf %133, %132 : vector<8x96xf32>
    %135 = arith.divf %133, %134 : vector<8x96xf32>
    %136 = vector.extract_strided_slice %129 {offsets = [0, 96], sizes = [8, 32], strides = [1, 1]} : vector<8x128xf32> to vector<8x32xf32>
    %137 = math.tanh %136 : vector<8x32xf32>
    %138 = vector.extract_strided_slice %135 {offsets = [0, 32], sizes = [8, 32], strides = [1, 1]} : vector<8x96xf32> to vector<8x32xf32>
    %139 = arith.mulf %138, %120 : vector<8x32xf32>
    %140 = vector.extract_strided_slice %135 {offsets = [0, 0], sizes = [8, 32], strides = [1, 1]} : vector<8x96xf32> to vector<8x32xf32>
    %141 = arith.mulf %140, %137 : vector<8x32xf32>
    %142 = arith.addf %139, %141 : vector<8x32xf32>
    %143 = vector.extract_strided_slice %135 {offsets = [0, 64], sizes = [8, 32], strides = [1, 1]} : vector<8x96xf32> to vector<8x32xf32>
    %144 = math.tanh %142 : vector<8x32xf32>
    %145 = arith.mulf %143, %144 : vector<8x32xf32>
    %146 = arith.truncf %145 : vector<8x32xf32> to vector<8x32xbf16>
    %c5_i32 = arith.constant 5 : i32
    %147 = arith.index_cast %c5_i32 : i32 to index
    %c0_42 = arith.constant 0 : index
    %c0_43 = arith.constant 0 : index
    %148 = vector.load %arg14[%147, %c0_42, %c0_43] : memref<8x8x128xf32, #tpu.memory_space<vmem>>, vector<1x8x128xf32>
    %149 = vector.shape_cast %148 : vector<1x8x128xf32> to vector<8x128xf32>
    %cst_44 = arith.constant dense<0.000000e+00> : vector<8x128xf32>
    %150 = tpu.matmul %146, %34, %cst_44 {dimension_numbers = #tpu.dot_dimension_numbers<[1], [0], [0], [1], [0, 0, 1, 1], [], []>} : vector<8x32xbf16>, vector<32x128xbf16>, vector<8x128xf32> -> vector<8x128xf32>
    %151 = arith.addf %149, %150 : vector<8x128xf32>
    %152 = vector.extract_strided_slice %151 {offsets = [0, 0], sizes = [8, 96], strides = [1, 1]} : vector<8x128xf32> to vector<8x96xf32>
    %153 = arith.negf %152 : vector<8x96xf32>
    %154 = math.exp %153 : vector<8x96xf32>
    %cst_45 = arith.constant 1.000000e+00 : f32
    %155 = vector.broadcast %cst_45 : f32 to vector<8x96xf32>
    %156 = arith.addf %155, %154 : vector<8x96xf32>
    %157 = arith.divf %155, %156 : vector<8x96xf32>
    %158 = vector.extract_strided_slice %151 {offsets = [0, 96], sizes = [8, 32], strides = [1, 1]} : vector<8x128xf32> to vector<8x32xf32>
    %159 = math.tanh %158 : vector<8x32xf32>
    %160 = vector.extract_strided_slice %157 {offsets = [0, 32], sizes = [8, 32], strides = [1, 1]} : vector<8x96xf32> to vector<8x32xf32>
    %161 = arith.mulf %160, %142 : vector<8x32xf32>
    %162 = vector.extract_strided_slice %157 {offsets = [0, 0], sizes = [8, 32], strides = [1, 1]} : vector<8x96xf32> to vector<8x32xf32>
    %163 = arith.mulf %162, %159 : vector<8x32xf32>
    %164 = arith.addf %161, %163 : vector<8x32xf32>
    %165 = vector.extract_strided_slice %157 {offsets = [0, 64], sizes = [8, 32], strides = [1, 1]} : vector<8x96xf32> to vector<8x32xf32>
    %166 = math.tanh %164 : vector<8x32xf32>
    %167 = arith.mulf %165, %166 : vector<8x32xf32>
    %168 = arith.truncf %167 : vector<8x32xf32> to vector<8x32xbf16>
    %c6_i32 = arith.constant 6 : i32
    %169 = arith.index_cast %c6_i32 : i32 to index
    %c0_46 = arith.constant 0 : index
    %c0_47 = arith.constant 0 : index
    %170 = vector.load %arg14[%169, %c0_46, %c0_47] : memref<8x8x128xf32, #tpu.memory_space<vmem>>, vector<1x8x128xf32>
    %171 = vector.shape_cast %170 : vector<1x8x128xf32> to vector<8x128xf32>
    %cst_48 = arith.constant dense<0.000000e+00> : vector<8x128xf32>
    %172 = tpu.matmul %168, %34, %cst_48 {dimension_numbers = #tpu.dot_dimension_numbers<[1], [0], [0], [1], [0, 0, 1, 1], [], []>} : vector<8x32xbf16>, vector<32x128xbf16>, vector<8x128xf32> -> vector<8x128xf32>
    %173 = arith.addf %171, %172 : vector<8x128xf32>
    %174 = vector.extract_strided_slice %173 {offsets = [0, 0], sizes = [8, 96], strides = [1, 1]} : vector<8x128xf32> to vector<8x96xf32>
    %175 = arith.negf %174 : vector<8x96xf32>
    %176 = math.exp %175 : vector<8x96xf32>
    %cst_49 = arith.constant 1.000000e+00 : f32
    %177 = vector.broadcast %cst_49 : f32 to vector<8x96xf32>
    %178 = arith.addf %177, %176 : vector<8x96xf32>
    %179 = arith.divf %177, %178 : vector<8x96xf32>
    %180 = vector.extract_strided_slice %173 {offsets = [0, 96], sizes = [8, 32], strides = [1, 1]} : vector<8x128xf32> to vector<8x32xf32>
    %181 = math.tanh %180 : vector<8x32xf32>
    %182 = vector.extract_strided_slice %179 {offsets = [0, 32], sizes = [8, 32], strides = [1, 1]} : vector<8x96xf32> to vector<8x32xf32>
    %183 = arith.mulf %182, %164 : vector<8x32xf32>
    %184 = vector.extract_strided_slice %179 {offsets = [0, 0], sizes = [8, 32], strides = [1, 1]} : vector<8x96xf32> to vector<8x32xf32>
    %185 = arith.mulf %184, %181 : vector<8x32xf32>
    %186 = arith.addf %183, %185 : vector<8x32xf32>
    %187 = vector.extract_strided_slice %179 {offsets = [0, 64], sizes = [8, 32], strides = [1, 1]} : vector<8x96xf32> to vector<8x32xf32>
    %188 = math.tanh %186 : vector<8x32xf32>
    %189 = arith.mulf %187, %188 : vector<8x32xf32>
    %190 = arith.truncf %189 : vector<8x32xf32> to vector<8x32xbf16>
    %c7_i32 = arith.constant 7 : i32
    %191 = arith.index_cast %c7_i32 : i32 to index
    %c0_50 = arith.constant 0 : index
    %c0_51 = arith.constant 0 : index
    %192 = vector.load %arg14[%191, %c0_50, %c0_51] : memref<8x8x128xf32, #tpu.memory_space<vmem>>, vector<1x8x128xf32>
    %193 = vector.shape_cast %192 : vector<1x8x128xf32> to vector<8x128xf32>
    %cst_52 = arith.constant dense<0.000000e+00> : vector<8x128xf32>
    %194 = tpu.matmul %190, %34, %cst_52 {dimension_numbers = #tpu.dot_dimension_numbers<[1], [0], [0], [1], [0, 0, 1, 1], [], []>} : vector<8x32xbf16>, vector<32x128xbf16>, vector<8x128xf32> -> vector<8x128xf32>
    %195 = arith.addf %193, %194 : vector<8x128xf32>
    %196 = vector.extract_strided_slice %195 {offsets = [0, 0], sizes = [8, 96], strides = [1, 1]} : vector<8x128xf32> to vector<8x96xf32>
    %197 = arith.negf %196 : vector<8x96xf32>
    %198 = math.exp %197 : vector<8x96xf32>
    %cst_53 = arith.constant 1.000000e+00 : f32
    %199 = vector.broadcast %cst_53 : f32 to vector<8x96xf32>
    %200 = arith.addf %199, %198 : vector<8x96xf32>
    %201 = arith.divf %199, %200 : vector<8x96xf32>
    %202 = vector.extract_strided_slice %195 {offsets = [0, 96], sizes = [8, 32], strides = [1, 1]} : vector<8x128xf32> to vector<8x32xf32>
    %203 = math.tanh %202 : vector<8x32xf32>
    %204 = vector.extract_strided_slice %201 {offsets = [0, 32], sizes = [8, 32], strides = [1, 1]} : vector<8x96xf32> to vector<8x32xf32>
    %205 = arith.mulf %204, %186 : vector<8x32xf32>
    %206 = vector.extract_strided_slice %201 {offsets = [0, 0], sizes = [8, 32], strides = [1, 1]} : vector<8x96xf32> to vector<8x32xf32>
    %207 = arith.mulf %206, %203 : vector<8x32xf32>
    %208 = arith.addf %205, %207 : vector<8x32xf32>
    %209 = vector.extract_strided_slice %201 {offsets = [0, 64], sizes = [8, 32], strides = [1, 1]} : vector<8x96xf32> to vector<8x32xf32>
    %210 = math.tanh %208 : vector<8x32xf32>
    %211 = arith.mulf %209, %210 : vector<8x32xf32>
    %212 = arith.truncf %211 : vector<8x32xf32> to vector<8x32xbf16>
    %c8_i32 = arith.constant 8 : i32
    %c0_54 = arith.constant 0 : index
    %c0_55 = arith.constant 0 : index
    %213 = vector.load %arg7[%c0_54, %c0_55] : memref<32x32xbf16, #tpu.memory_space<vmem>>, vector<32x32xbf16>
    %cst_56 = arith.constant dense<0.000000e+00> : vector<8x32xf32>
    %214 = tpu.matmul %212, %213, %cst_56 {dimension_numbers = #tpu.dot_dimension_numbers<[1], [0], [0], [1], [0, 0, 1, 1], [], []>} : vector<8x32xbf16>, vector<32x32xbf16>, vector<8x32xf32> -> vector<8x32xf32>
    %c0_57 = arith.constant 0 : index
    %c0_58 = arith.constant 0 : index
    %215 = vector.load %arg8[%c0_57, %c0_58] : memref<1x32xf32, #tpu.memory_space<vmem>>, vector<1x32xf32>
    %216 = vector.broadcast %215 : vector<1x32xf32> to vector<8x32xf32>
    %217 = arith.addf %214, %216 : vector<8x32xf32>
    %cst_59 = arith.constant 0.000000e+00 : f32
    %218 = vector.broadcast %cst_59 : f32 to vector<8x32xf32>
    %219 = arith.maximumf %217, %218 : vector<8x32xf32>
    %220 = arith.truncf %219 : vector<8x32xf32> to vector<8x32xbf16>
    %c0_60 = arith.constant 0 : index
    %c0_61 = arith.constant 0 : index
    %221 = vector.load %arg9[%c0_60, %c0_61] : memref<32x16xbf16, #tpu.memory_space<vmem>>, vector<32x16xbf16>
    %cst_62 = arith.constant dense<0.000000e+00> : vector<8x16xf32>
    %222 = tpu.matmul %220, %221, %cst_62 {dimension_numbers = #tpu.dot_dimension_numbers<[1], [0], [0], [1], [0, 0, 1, 1], [], []>} : vector<8x32xbf16>, vector<32x16xbf16>, vector<8x16xf32> -> vector<8x16xf32>
    %c0_63 = arith.constant 0 : index
    %c0_64 = arith.constant 0 : index
    %223 = vector.load %arg10[%c0_63, %c0_64] : memref<1x16xf32, #tpu.memory_space<vmem>>, vector<1x16xf32>
    %224 = vector.broadcast %223 : vector<1x16xf32> to vector<8x16xf32>
    %225 = arith.addf %222, %224 : vector<8x16xf32>
    %cst_65 = arith.constant 0.000000e+00 : f32
    %226 = vector.broadcast %cst_65 : f32 to vector<8x16xf32>
    %227 = arith.maximumf %225, %226 : vector<8x16xf32>
    %228 = arith.truncf %227 : vector<8x16xf32> to vector<8x16xbf16>
    %c0_66 = arith.constant 0 : index
    %c0_67 = arith.constant 0 : index
    %229 = vector.load %arg11[%c0_66, %c0_67] : memref<16x128xbf16, #tpu.memory_space<vmem>>, vector<16x128xbf16>
    %cst_68 = arith.constant dense<0.000000e+00> : vector<8x128xf32>
    %230 = tpu.matmul %228, %229, %cst_68 {dimension_numbers = #tpu.dot_dimension_numbers<[1], [0], [0], [1], [0, 0, 1, 1], [], []>} : vector<8x16xbf16>, vector<16x128xbf16>, vector<8x128xf32> -> vector<8x128xf32>
    %c0_69 = arith.constant 0 : index
    %c0_70 = arith.constant 0 : index
    %231 = vector.load %arg12[%c0_69, %c0_70] : memref<1x128xf32, #tpu.memory_space<vmem>>, vector<1x128xf32>
    %232 = vector.broadcast %231 : vector<1x128xf32> to vector<8x128xf32>
    %233 = arith.addf %230, %232 : vector<8x128xf32>
    %c0_71 = arith.constant 0 : index
    %c0_72 = arith.constant 0 : index
    %234 = vector.load %arg13[%c0_71, %c0_72] : memref<8x128xf32, #tpu.memory_space<vmem>>, vector<8x128xf32>
    tpu.vector_store %arg13[%c0_71, %c0_72], %233 {strides = array<i32>} : memref<8x128xf32, #tpu.memory_space<vmem>>, vector<8x128xf32>,
    return
  }
  func.func @transform_0(%arg0: i32) -> (i32, i32, i32) {
    %c0_i32 = arith.constant 0 : i32
    %c0_i32_0 = arith.constant 0 : i32
    %c0_i32_1 = arith.constant 0 : i32
    return %c0_i32, %arg0, %c0_i32_0 : i32, i32, i32
  }
  func.func @transform_1(%arg0: i32) -> (i32, i32) {
    %c0_i32 = arith.constant 0 : i32
    %c0_i32_0 = arith.constant 0 : i32
    %c0_i32_1 = arith.constant 0 : i32
    return %c0_i32, %c0_i32_0 : i32, i32
  }
  func.func @transform_2(%arg0: i32) -> (i32, i32) {
    %c0_i32 = arith.constant 0 : i32
    %c0_i32_0 = arith.constant 0 : i32
    %c0_i32_1 = arith.constant 0 : i32
    return %c0_i32, %c0_i32_0 : i32, i32
  }
  func.func @transform_3(%arg0: i32) -> (i32, i32) {
    %c0_i32 = arith.constant 0 : i32
    %c0_i32_0 = arith.constant 0 : i32
    %c0_i32_1 = arith.constant 0 : i32
    return %c0_i32, %c0_i32_0 : i32, i32
  }
  func.func @transform_4(%arg0: i32) -> (i32, i32) {
    %c0_i32 = arith.constant 0 : i32
    %c0_i32_0 = arith.constant 0 : i32
    %c0_i32_1 = arith.constant 0 : i32
    return %c0_i32, %c0_i32_0 : i32, i32
  }
  func.func @transform_5(%arg0: i32) -> (i32, i32) {
    %c0_i32 = arith.constant 0 : i32
    %c0_i32_0 = arith.constant 0 : i32
    %c0_i32_1 = arith.constant 0 : i32
    return %c0_i32, %c0_i32_0 : i32, i32
  }
  func.func @transform_6(%arg0: i32) -> (i32, i32) {
    %c0_i32 = arith.constant 0 : i32
    %c0_i32_0 = arith.constant 0 : i32
    %c0_i32_1 = arith.constant 0 : i32
    return %c0_i32, %c0_i32_0 : i32, i32
  }
  func.func @transform_7(%arg0: i32) -> (i32, i32) {
    %c0_i32 = arith.constant 0 : i32
    %c0_i32_0 = arith.constant 0 : i32
    %c0_i32_1 = arith.constant 0 : i32
    return %c0_i32, %c0_i32_0 : i32, i32
  }
  func.func @transform_8(%arg0: i32) -> (i32, i32) {
    %c0_i32 = arith.constant 0 : i32
    %c0_i32_0 = arith.constant 0 : i32
    %c0_i32_1 = arith.constant 0 : i32
    return %c0_i32, %c0_i32_0 : i32, i32
  }
  func.func @transform_9(%arg0: i32) -> (i32, i32) {
    %c0_i32 = arith.constant 0 : i32
    %c0_i32_0 = arith.constant 0 : i32
    %c0_i32_1 = arith.constant 0 : i32
    return %c0_i32, %c0_i32_0 : i32, i32
  }
  func.func @transform_10(%arg0: i32) -> (i32, i32) {
    %c0_i32 = arith.constant 0 : i32
    %c0_i32_0 = arith.constant 0 : i32
    %c0_i32_1 = arith.constant 0 : i32
    return %c0_i32, %c0_i32_0 : i32, i32
  }
  func.func @transform_11(%arg0: i32) -> (i32, i32) {
    %c0_i32 = arith.constant 0 : i32
    %c0_i32_0 = arith.constant 0 : i32
    %c0_i32_1 = arith.constant 0 : i32
    return %c0_i32, %c0_i32_0 : i32, i32
  }
  func.func @transform_12(%arg0: i32) -> (i32, i32) {
    %c0_i32 = arith.constant 0 : i32
    %c0_i32_0 = arith.constant 0 : i32
    return %arg0, %c0_i32 : i32, i32
  }
}

</mosaic_0001>

<bundles_post_ra>
// kernel: tpu_custom_call.1
= control target key start
LH: loop header
LB: loop body
LE: loop exit
PB: predicated region body
PF: predicated region fallthrough
CT: control target
= control target key end

     0   :  { %17 = vsyncpa [#allocation4], 0  ;;  %s1953_s0 = inlined_call_operand.hbm [shape: f32[8,8,16], index: 0, kind: input, shape index: {}]   ;;  %s1954_s1 = inlined_call_operand.hbm [shape: f32[1,16], index: 1, kind: input, shape index: {}]   ;;  %s1955_s2 = inlined_call_operand.hbm [shape: f32[1,16], index: 2, kind: input, shape index: {}]   ;;  %s1956_s3 = inlined_call_operand.hbm [shape: bf16[16,128], index: 3, kind: input, shape index: {}]   ;;  %s1957_s4 = inlined_call_operand.vmem [shape: bf16[32,128], index: 4, kind: input, shape index: {}]   ;;  %s1958_s5 = inlined_call_operand.hbm [shape: f32[1,128], index: 5, kind: input, shape index: {}]   ;;  %s1959_s6 = inlined_call_operand.vmem [shape: bf16[32,32], index: 6, kind: input, shape index: {}]   ;;  %s1960_s7 = inlined_call_operand.hbm [shape: f32[1,32], index: 7, kind: input, shape index: {}]   ;;  %s1961_s8 = inlined_call_operand.vmem [shape: bf16[32,16], index: 8, kind: input, shape index: {}]   ;;  %s1962_s9 = inlined_call_operand.hbm [shape: f32[1,16], index: 9, kind: input, shape index: {}]   ;;  %s1963_s10 = inlined_call_operand.vmem [shape: bf16[16,128], index: 10, kind: input, shape index: {}]   ;;  %s1964_s11 = inlined_call_operand.vmem [shape: f32[1,128], index: 11, kind: input, shape index: {}]   ;;  %s1965_s12 = inlined_call_operand.hbm [shape: f32[8,128], index: 12, kind: output, shape index: {}]  }
   0x1   :  { %18 = vsyncpa [#allocation7], 0 }
   0x2   :  { %19 = vsyncpa [#allocation10], 0 }
   0x3   :  { %20 = vsyncpa [#allocation13], 0 }
   0x4   :  { %21 = vsyncpa [#allocation5], 0  ;;  %s1640_s21 = smov [#allocation6]   ;;  %s1641_s23 = smov [#allocation9]  }
   0x5   :  { %s40_s22 = sshll.u32 %s1640_s21, 4  ;;  %s59_s24 = sshll.u32 %s1641_s23, 4  ;;  %s41_s22 = int_to_ptr.vmem [resolvable:$true] %s40_s22  ;;  %s60_s24 = int_to_ptr.vmem [resolvable:$true] %s59_s24 }
   0x6   :  { %s1478_s25 = scalar_lea.vmem %s41_s22, 16  ;;  %s1482_s26 = scalar_lea.vmem %s41_s22, 32 }
   0x7   :  { %p1479_p0 = scmp.ne.s32.totalorder %s41_s22, %s1478_s25  ;;  %p1483_p1 = scmp.lt.s32.totalorder %s41_s22, %s41_s22 }
   0x8   :  { %p1484_p2 = scmp.lt.s32.totalorder %s1482_s26, %s1478_s25 }
   0xa   :  { %p1485_p3 = por %p1484_p2, %p1483_p1 }
   0xc   :  { %p1486_p4 = pnand %p1485_p3, %p1479_p0 }
   0xe   :  { %1489 = shalt.err (!%p1486_p4)
}
   0xf   :  { %43 = dma.hbm_to_vmem [thread:$0]  %s1954_s1, 16, %s41_s22, [#allocation7]  }
  0x10   :  { %s1498_s29 = scalar_lea.vmem %s60_s24, 128  ;;  %p1503_p6 = scmp.lt.s32.totalorder %s60_s24, %s60_s24 }
  0x11   :  { %p1499_p5 = scmp.ne.s32.totalorder %s60_s24, %s1498_s29  ;;  %p1504_p7 = scmp.lt.s32.totalorder %s1498_s29, %s1498_s29 }
  0x13   :  { %p1505_p8 = por %p1504_p7, %p1503_p6 }
  0x15   :  { %p1506_p9 = pnand %p1505_p8, %p1499_p5 }
  0x17   :  { %1509 = shalt.err (!%p1506_p9)
}
  0x18   :  { %s1642_s30 = smov 64   ;;  %s1643_s13 = smov 4  }
  0x19   :  { %65 = dma.hbm_to_vmem [thread:$0]  %s1956_s3, 128, %s60_s24, [#allocation10], %s1642_s30, %s1642_s30, %s1643_s13  }
  0x1a   :  { %s1644_s16 = smov [#allocation12]   ;;  %s1645_s18 = smov [#allocation3]  }
  0x1b   :  { %s86_s17 = sshll.u32 %s1644_s16, 4  ;;  %s27_s19 = sshll.u32 %s1645_s18, 4  ;;  %s87_s17 = int_to_ptr.vmem [resolvable:$true] %s86_s17  ;;  %s28_s19 = int_to_ptr.vmem [resolvable:$true] %s27_s19 }
  0x1c   :  { %s1518_s1 = scalar_lea.vmem %s87_s17, 16  ;;  %s1522_s20 = scalar_lea.vmem %s87_s17, 32 }
  0x1d   :  { %p1519_p10 = scmp.ne.s32.totalorder %s87_s17, %s1518_s1  ;;  %p1523_p11 = scmp.lt.s32.totalorder %s87_s17, %s87_s17 }
  0x1e   :  { %p1524_p12 = scmp.lt.s32.totalorder %s1522_s20, %s1518_s1 }
  0x20   :  { %p1525_p13 = por %p1524_p12, %p1523_p11 }
  0x22   :  { %p1526_p0 = pnand %p1525_p13, %p1519_p10 }
  0x24   :  { %1529 = shalt.err (!%p1526_p0)
}
  0x25   :  { %89 = dma.hbm_to_vmem [thread:$0]  %s1960_s7, 16, %s87_s17, [#allocation13]  }
  0x26   :  { %s1538_s23 = scalar_lea.vmem %s28_s19, 1024  ;;  %p1543_p2 = scmp.lt.s32.totalorder %s28_s19, %s28_s19 }
  0x27   :  { %p1539_p1 = scmp.ne.s32.totalorder %s28_s19, %s1538_s23  ;;  %p1544_p3 = scmp.lt.s32.totalorder %s1538_s23, %s1538_s23 }
  0x29   :  { %p1545_p4 = por %p1544_p3, %p1543_p2 }
  0x2b   :  { %p1546_p5 = pnand %p1545_p4, %p1539_p1 }
  0x2d   :  { %1549 = shalt.err (!%p1546_p5)
}
  0x2e   :  { %s1646_s3 = smov 128   ;;  %s1647_s24 = smov 8  }
  0x2f   :  { %33 = dma.hbm_to_vmem [thread:$0]  %s1953_s0, 1024, %s28_s19, [#allocation4], %s1646_s3, %s1646_s3, %s1647_s24  }
  0x30   :  { %s1648_s27 = smov [#allocation8]   ;;  %s1649_s29 = smov [#allocation11]  }
  0x31   :  { %s50_s28 = sshll.u32 %s1648_s27, 4  ;;  %s74_s13 = sshll.u32 %s1649_s29, 4  ;;  %s51_s28 = int_to_ptr.vmem [resolvable:$true] %s50_s28  ;;  %s75_s13 = int_to_ptr.vmem [resolvable:$true] %s74_s13 }
  0x32   :  { %s1558_s7 = scalar_lea.vmem %s51_s28, 16  ;;  %s1562_s14 = scalar_lea.vmem %s51_s28, 32 }
  0x33   :  { %p1559_p6 = scmp.ne.s32.totalorder %s51_s28, %s1558_s7  ;;  %p1563_p7 = scmp.lt.s32.totalorder %s51_s28, %s51_s28 }
  0x34   :  { %p1564_p8 = scmp.lt.s32.totalorder %s1562_s14, %s1558_s7 }
  0x36   :  { %p1565_p9 = por %p1564_p8, %p1563_p7 }
  0x38   :  { %p1566_p10 = pnand %p1565_p9, %p1559_p6 }
  0x3a   :  { %1569 = shalt.err (!%p1566_p10)
}
  0x3b   :  { %53 = dma.hbm_to_vmem [thread:$0]  %s1955_s2, 16, %s51_s28, [#allocation7]  }
  0x3c   :  { %s1578_s17 = scalar_lea.vmem %s75_s13, 16  ;;  %s1582_s0 = scalar_lea.vmem %s75_s13, 32 }
  0x3d   :  { %p1579_p11 = scmp.ne.s32.totalorder %s75_s13, %s1578_s17  ;;  %p1583_p12 = scmp.lt.s32.totalorder %s75_s13, %s75_s13 }
  0x3e   :  { %p1584_p13 = scmp.lt.s32.totalorder %s1582_s0, %s1578_s17 }
  0x40   :  { %p1585_p0 = por %p1584_p13, %p1583_p12 }
  0x42   :  { %p1586_p1 = pnand %p1585_p0, %p1579_p11 }
  0x44   :  { %1589 = shalt.err (!%p1586_p1)
}
  0x45   :  { %77 = dma.hbm_to_vmem [thread:$0]  %s1958_s5, 16, %s75_s13, [#allocation10]  }
  0x46   :  { %s1650_s1 = smov [#allocation14]  }
  0x47   :  { %s98_s20 = sshll.u32 %s1650_s1, 4  ;;  %s99_s20 = int_to_ptr.vmem [resolvable:$true] %s98_s20 }
  0x48   :  { %s1598_s21 = scalar_lea.vmem %s99_s20, 16  ;;  %s1602_s22 = scalar_lea.vmem %s99_s20, 32 }
  0x49   :  { %p1599_p2 = scmp.ne.s32.totalorder %s99_s20, %s1598_s21  ;;  %p1603_p3 = scmp.lt.s32.totalorder %s99_s20, %s99_s20 }
  0x4a   :  { %p1604_p4 = scmp.lt.s32.totalorder %s1602_s22, %s1598_s21 }
  0x4c   :  { %p1605_p5 = por %p1604_p4, %p1603_p3 }
  0x4e   :  { %p1606_p6 = pnand %p1605_p5, %p1599_p2 }
  0x50   :  { %1609 = shalt.err (!%p1606_p6)
}
  0x51   :  { %101 = dma.hbm_to_vmem [thread:$0]  %s1962_s9, 16, %s99_s20, [#allocation13]  }
  0x52   :  { %1630 = dma.done.wait [#allocation4], 1024  }
  0x53   :  { %1631 = vsyncadd [#allocation4], 4294966272 }
  0x54   :  { %1632 = dma.done.wait [#allocation7], 32  }
  0x55   :  { %1633 = vsyncadd [#allocation7], 4294967264 }
  0x56   :  { %1634 = dma.done.wait [#allocation10], 144  }
  0x57   :  { %1635 = vsyncadd [#allocation10], 4294967152 }
  0x58   :  { %1636 = dma.done.wait [#allocation13], 32  }
  0x59   :  { %1637 = vsyncadd [#allocation13], 4294967264  ;;  %vm136_vm0 = vcmask 130048   ;;  %v128_v0 = vld [vmem:[#allocation3] sm:$0xff]  ;;  %v130_v1 = vld [vmem:[#allocation3 + $0x10] sm:$0xff]  ;;  %v1651_v30 = vmov 0.0  }
  0x5a   :  { %v129_v2 = vld [vmem:[#allocation3 + $0x8] sm:$0xff]  ;;  %v137_v3 = vsel %vm136_vm0, %v128_v0, 0.0  ;;  %v143_v4 = vsel %vm136_vm0, %v130_v1, 0.0  ;;  %v131_v5 = vld [vmem:[#allocation3 + $0x18] sm:$0xff]  ;;  %1280 = vmatprep.subr.bf16.mxu1 %v1651_v30  ;;  %v1766_v31 = vld [vmem:[%s1957_s4] sm:$0xff]   ;;  %vm1652_vm1 = vmmov 0  }
  0x5b   :  { %138 = vadd.xlane.f32.xlu0 %v137_v3  ;;  %144 = vadd.xlane.f32.xlu1 %v143_v4  ;;  %v140_v6 = vsel %vm136_vm0, %v129_v2, 0.0  ;;  %v146_v7 = vsel %vm136_vm0, %v131_v5, 0.0  ;;  %v1759_v28 = vld [vmem:[%s1957_s4 + $0x8] sm:$0xff]   ;;  %v1653_v32 = vmov 0   ;;  %v1780_v47 = vld [vmem:[#allocation6] ss:$0 sm:$0xff] }
  0x5c   :  { %v1384_v29 = vld [vmem:[#allocation9] sm:$0xff]   ;;  %1281 = vmatpush3.bf16.msra.mxu1 %v1759_v28  ;;  %1284 = vmatprep.mubr.msk.bf16.mxu1 %vm1652_vm1, %v1651_v30  ;;  %v1783_v52 = vld [vmem:[#allocation8] ss:$0 sm:$0xff]  ;;  %s1654_s4 = smov 32   ;;  %vm393_vm2 = vcmask 261120  }
  0x5d   :  { %1270 = vmatprep.subr.bf16.mxu0 %v1384_v29  ;;  %1282 = vmatprep.subr.bf16.mxu1 %v1651_v30 }
  0x5e   :  { %1271 = vmatpush3.bf16.msra.mxu0 %v1384_v29 }
  0x5f   :  { %141 = vadd.xlane.f32.xlu0 %v140_v6  ;;  %147 = vadd.xlane.f32.xlu1 %v146_v7  ;;  %v1801_v6 = vld [vmem:[#allocation11] ss:$0 sm:$0xff] }
  0x60   :  { %1296 = vmatprep.subr.bf16.mxu0 %v1651_v30  ;;  %1283 = vmatpush3.bf16.msra.mxu1 %v1766_v31 }
  0x61   :  { %1288 = vmatprep.subr.bf16.mxu1 %v1651_v30 }
  0x63   :  { %1285 = vmatmul.mubr.bf16.vlgmr.msra.gmra.mxu1 %v1653_v32 }
  0x64   :  { %1289 = vmatpush3.bf16.msra.mxu1 %v1759_v28  ;;  %1292 = vmatprep.mubr.msk.bf16.mxu1 %vm1652_vm1, %v1651_v30 }
  0x65   :  { %1290 = vmatprep.subr.bf16.mxu1 %v1651_v30 }
  0x68   :  { %1291 = vmatpush3.bf16.msra.mxu1 %v1766_v31 }
  0x69   :  { %1304 = vmatprep.subr.bf16.mxu1 %v1651_v30 }
  0xe4   :  { %v139_v8 = vpop.xlane.xlu0 %138  ;;  %v145_v9 = vpop.xlane.xlu1 %144 }
  0xe5   :  { %v162_v10 = vmul.f32 0.0625, %v139_v8  ;;  %v164_v11 = vmul.f32 0.0625, %v145_v9 }
  0xe7   :  { %v170_v12 = vsub.f32 %v128_v0, %v162_v10  ;;  %v1748_v13 = vsub.f32 %v130_v1, %v164_v11 }
  0xe8   :  { %v142_v14 = vpop.xlane.xlu0 %141  ;;  %v148_v15 = vpop.xlane.xlu1 %147 }
  0xe9   :  { %v163_v16 = vmul.f32 0.0625, %v142_v14  ;;  %v165_v17 = vmul.f32 0.0625, %v148_v15  ;;  %v178_v18 = vmul.f32 %v170_v12, %v170_v12  ;;  %v180_v19 = vmul.f32 %v1748_v13, %v1748_v13 }
  0xeb   :  { %v171_v20 = vsub.f32 %v129_v2, %v163_v16  ;;  %v173_v21 = vsub.f32 %v131_v5, %v165_v17  ;;  %v186_v22 = vsel %vm136_vm0, %v178_v18, 0.0  ;;  %v192_v23 = vsel %vm136_vm0, %v180_v19, 0.0 }
  0xec   :  { %187 = vadd.xlane.f32.xlu0 %v186_v22 }
  0xed   :  { %v179_v24 = vmul.f32 %v171_v20, %v171_v20  ;;  %v181_v25 = vmul.f32 %v173_v21, %v173_v21 }
  0xef   :  { %v189_v26 = vsel %vm136_vm0, %v179_v24, 0.0  ;;  %v195_v27 = vsel %vm136_vm0, %v181_v25, 0.0 }
  0xf0   :  { %193 = vadd.xlane.f32.xlu0 %v192_v23  ;;  %190 = vadd.xlane.f32.xlu1 %v189_v26 }
  0xf4   :  { %196 = vadd.xlane.f32.xlu1 %v195_v27 }
 0x123   :  { %v431_v1 = vpop.f32.mrf.mxu1 }
 0x125   :  { %v1286_v2 = vpop.f32.mrf.mxu1 }
 0x127   :  { %v434_v3 = vpop.f32.mrf.mxu1 }
 0x129   :  { %v1287_v4 = vpop.f32.mrf.mxu1 }
 0x175   :  { %v188_v33 = vpop.xlane.xlu0 %187 }
 0x176   :  { %v210_v34 = vmul.f32 0.0625, %v188_v33 }
 0x178   :  { %v218_v35 = vadd.f32 1e-05, %v210_v34 }
 0x179   :  { %v191_v36 = vpop.xlane.xlu1 %190  ;;  %v194_v37 = vpop.xlane.xlu0 %193 }
 0x17a   :  { %1390 = vrsqrt.f32 %v218_v35  ;;  %v211_v38 = vmul.f32 0.0625, %v191_v36  ;;  %v212_v39 = vmul.f32 0.0625, %v194_v37  ;;  %v132_v37 = vld [vmem:[#allocation3 + $0x20] sm:$0xff] }
 0x17c   :  { %v219_v40 = vadd.f32 1e-05, %v211_v38  ;;  %v220_v41 = vadd.f32 1e-05, %v212_v39  ;;  %v149_v38 = vsel %vm136_vm0, %v132_v37, 0.0  ;;  %v134_v39 = vld [vmem:[#allocation3 + $0x30] sm:$0xff] }
 0x17d   :  { %v197_v42 = vpop.xlane.xlu1 %196 }
 0x17e   :  { %1392 = vrsqrt.f32 %v219_v40  ;;  %v213_v43 = vmul.f32 0.0625, %v197_v42  ;;  %v155_v40 = vsel %vm136_vm0, %v134_v39, 0.0 }
 0x17f   :  { %1394 = vrsqrt.f32 %v220_v41  ;;  %v135_v41 = vld [vmem:[#allocation3 + $0x38] sm:$0xff] }
 0x180   :  { %v221_v44 = vadd.f32 1e-05, %v213_v43  ;;  %v158_v42 = vsel %vm136_vm0, %v135_v41, 0.0 }
 0x182   :  { %1396 = vrsqrt.f32 %v221_v44 }
 0x187   :  { %v1391_v45 = vpop.eup %1390 }
 0x188   :  { %v234_v46 = vmul.f32 %v1391_v45, %v170_v12 }
 0x18a   :  { %v249_v51 = vmul.f32 %v1780_v47, %v234_v46 }
 0x18b   :  { %v1393_v48 = vpop.eup %1392 }
 0x18c   :  { %v1395_v49 = vpop.eup %1394  ;;  %v235_v50 = vmul.f32 %v1393_v48, %v171_v20  ;;  %v264_v56 = vadd.f32 %v1783_v52, %v249_v51 }
 0x18d   :  { %v236_v53 = vmul.f32 %v1395_v49, %v1748_v13 }
 0x18e   :  { %v250_v54 = vmul.f32 %v1780_v47, %v235_v50  ;;  %v133_v50 = vld [vmem:[#allocation3 + $0x28] sm:$0xff] }
 0x18f   :  { %v1397_v55 = vpop.eup %1396  ;;  %v251_v59 = vmul.f32 %v1780_v47, %v236_v53  ;;  %v152_v51 = vsel %vm136_vm0, %v133_v50, 0.0 }
 0x190   :  { %v265_v57 = vadd.f32 %v1783_v52, %v250_v54  ;;  %v237_v58 = vmul.f32 %v1397_v55, %v173_v21 }
 0x191   :  { %v266_v62 = vadd.f32 %v1783_v52, %v251_v59 }
 0x192   :  { %v272_v60 = vpack.c.bf16 %v265_v57, %v264_v56  ;;  %v252_v61 = vmul.f32 %v1780_v47, %v237_v58 }
 0x194   :  { %1272 = vmatprep.mubr.msk.bf16.mxu0 %vm136_vm0, %v272_v60  ;;  %v267_v63 = vadd.f32 %v1783_v52, %v252_v61 }
 0x196   :  { %v273_v0 = vpack.c.bf16 %v267_v63, %v266_v62 }
 0x198   :  { %1273 = vmatmul.mubr.msk.bf16.vlgmr.msra.gmra.mxu0 %vm136_vm0, %v273_v0 }
 0x199   :  { %1297 = vmatpush3.bf16.msra.mxu0 %v1759_v28 }
 0x19a   :  { %1298 = vmatprep.subr.bf16.mxu0 %v1651_v30 }
 0x19d   :  { %1299 = vmatpush3.bf16.msra.mxu0 %v1766_v31 }
 0x19e   :  { %1312 = vmatprep.subr.bf16.mxu0 %v1651_v30 }
 0x258   :  { %v1799_v5 = vpop.f32.mrf.mxu0 }
 0x25a   :  { %v337_v7 = vpop.f32.mrf.mxu0 }
 0x25b   :  { %v338_v8 = vadd.f32 %v1801_v6, %v337_v7 }
 0x25c   :  { %v1815_v25 = vpop.f32.mrf.mxu0 }
 0x25d   :  { %v437_v9 = vadd.f32 %v431_v1, %v338_v8 }
 0x25e   :  { %v340_v26 = vpop.f32.mrf.mxu0 }
 0x25f   :  { %1398 = vtanh.f32 %v437_v9  ;;  %v1207_v11 = vmul.f32 -1.442695, %v437_v9  ;;  %v341_v27 = vadd.f32 %v1801_v6, %v340_v26 }
 0x261   :  { %1400 = vpow2.f32 %v1207_v11 }
 0x26c   :  { %v1399_v10 = vpop.eup %1398 }
 0x26d   :  { %447 = vrot.lane.b32.xlu0 %v1399_v10, %s1654_s4 }
 0x26e   :  { %v1401_v12 = vpop.eup %1400 }
 0x26f   :  { %v441_v13 = vadd.f32 1.0, %v1401_v12 }
 0x271   :  { %1402 = vrcp.f32 %v441_v13 }
 0x27e   :  { %v1403_v14 = vpop.eup %1402 }
 0x27f   :  { %v445_v17 = vmul.f32 0.0, %v1403_v14 }
 0x2df   :  { %v448_v15 = vpop.permute.xlu0 %447 }
 0x2e0   :  { %v450_v16 = vmul.f32 %v1403_v14, %v448_v15 }
 0x2e2   :  { %452 = vrot.lane.b32.xlu1 %v450_v16, %s1654_s4 }
 0x354   :  { %v453_v18 = vpop.permute.xlu1 %452 }
 0x355   :  { %v455_v19 = vadd.f32 %v453_v18, %v445_v17 }
 0x357   :  { %1404 = vtanh.f32 %v455_v19 }
 0x364   :  { %v1405_v20 = vpop.eup %1404 }
 0x365   :  { %458 = vrot.lane.b32.xlu1 %v1405_v20, %s1654_s4 }
 0x3d7   :  { %v459_v21 = vpop.permute.xlu1 %458 }
 0x3d8   :  { %v461_v22 = vmul.f32 %v1403_v14, %v459_v21 }
 0x3da   :  { %v462_v23 = vpack.c.bf16 %v461_v22, %v461_v22 }
 0x3dc   :  { %466 = vrot.lane.b32.xlu1 %v462_v23, %s1642_s30 }
 0x44e   :  { %v467_v24 = vpop.permute.xlu1 %466 }
 0x44f   :  { %1293 = vmatmul.mubr.msk.bf16.vlgmr.msra.gmra.mxu1 %vm393_vm2, %v467_v24 }
 0x450   :  { %1305 = vmatpush3.bf16.msra.mxu1 %v1759_v28  ;;  %1308 = vmatprep.mubr.msk.bf16.mxu1 %vm1652_vm1, %v1651_v30 }
 0x451   :  { %1306 = vmatprep.subr.bf16.mxu1 %v1651_v30 }
 0x454   :  { %1307 = vmatpush3.bf16.msra.mxu1 %v1766_v31 }
 0x455   :  { %1320 = vmatprep.subr.bf16.mxu1 %v1651_v30 }
 0x50f   :  { %v505_v29 = vpop.f32.mrf.mxu1 }
 0x510   :  { %v511_v32 = vadd.f32 %v505_v29, %v341_v27 }
 0x511   :  { %v1294_v33 = vpop.f32.mrf.mxu1 }
 0x512   :  { %1406 = vtanh.f32 %v511_v32  ;;  %v1209_v43 = vmul.f32 -1.442695, %v511_v32 }
 0x513   :  { %v508_v34 = vpop.f32.mrf.mxu1 }
 0x514   :  { %1408 = vpow2.f32 %v1209_v43 }
 0x515   :  { %v1295_v35 = vpop.f32.mrf.mxu1 }
 0x51f   :  { %v1407_v36 = vpop.eup %1406 }
 0x520   :  { %521 = vrot.lane.b32.xlu0 %v1407_v36, %s1654_s4 }
 0x521   :  { %v1409_v44 = vpop.eup %1408 }
 0x522   :  { %v515_v45 = vadd.f32 1.0, %v1409_v44 }
 0x524   :  { %1410 = vrcp.f32 %v515_v45 }
 0x531   :  { %v1411_v46 = vpop.eup %1410 }
 0x532   :  { %v519_v58 = vmul.f32 %v1411_v46, %v455_v19 }
 0x53f   :  { %150 = vadd.xlane.f32.xlu0 %v149_v38 }
 0x543   :  { %156 = vadd.xlane.f32.xlu0 %v155_v40 }
 0x547   :  { %159 = vadd.xlane.f32.xlu0 %v158_v42 }
 0x592   :  { %v522_v48 = vpop.permute.xlu0 %521 }
 0x593   :  { %v524_v49 = vmul.f32 %v1411_v46, %v522_v48 }
 0x595   :  { %526 = vrot.lane.b32.xlu1 %v524_v49, %s1654_s4 }
 0x5b9   :  { %153 = vadd.xlane.f32.xlu1 %v152_v51 }
 0x5c8   :  { %v151_v53 = vpop.xlane.xlu0 %150 }
 0x5c9   :  { %v166_v54 = vmul.f32 0.0625, %v151_v53 }
 0x5cb   :  { %v174_v55 = vsub.f32 %v132_v37, %v166_v54 }
 0x5cc   :  { %v157_v62 = vpop.xlane.xlu0 %156 }
 0x5cd   :  { %v182_v56 = vmul.f32 %v174_v55, %v174_v55  ;;  %v168_v63 = vmul.f32 0.0625, %v157_v62 }
 0x5cf   :  { %v198_v57 = vsel %vm136_vm0, %v182_v56, 0.0  ;;  %v176_v3 = vsub.f32 %v134_v39, %v168_v63 }
 0x5d0   :  { %199 = vadd.xlane.f32.xlu1 %v198_v57  ;;  %v160_v0 = vpop.xlane.xlu0 %159  ;;  %v346_v57 = vadd.f32 %v1799_v5, %v1801_v6 }
 0x5d1   :  { %v169_v4 = vmul.f32 0.0625, %v160_v0  ;;  %v184_v10 = vmul.f32 %v176_v3, %v176_v3 }
 0x5d3   :  { %v177_v8 = vsub.f32 %v135_v41, %v169_v4  ;;  %v204_v12 = vsel %vm136_vm0, %v184_v10, 0.0 }
 0x5d5   :  { %v185_v13 = vmul.f32 %v177_v8, %v177_v8 }
 0x5d7   :  { %v207_v14 = vsel %vm136_vm0, %v185_v13, 0.0 }
 0x607   :  { %v527_v59 = vpop.permute.xlu1 %526 }
 0x608   :  { %v1825_v60 = vadd.f32 %v527_v59, %v519_v58 }
 0x60a   :  { %1412 = vtanh.f32 %v1825_v60 }
 0x617   :  { %v1413_v61 = vpop.eup %1412 }
 0x618   :  { %532 = vrot.lane.b32.xlu0 %v1413_v61, %s1654_s4 }
 0x642   :  { %v154_v1 = vpop.xlane.xlu1 %153 }
 0x643   :  { %v167_v2 = vmul.f32 0.0625, %v154_v1 }
 0x645   :  { %v175_v7 = vsub.f32 %v133_v50, %v167_v2 }
 0x647   :  { %v183_v9 = vmul.f32 %v175_v7, %v175_v7 }
 0x649   :  { %v201_v11 = vsel %vm136_vm0, %v183_v9, 0.0 }
 0x64a   :  { %202 = vadd.xlane.f32.xlu1 %v201_v11 }
 0x64e   :  { %205 = vadd.xlane.f32.xlu1 %v204_v12 }
 0x652   :  { %208 = vadd.xlane.f32.xlu1 %v207_v14 }
 0x659   :  { %v200_v18 = vpop.xlane.xlu1 %199 }
 0x65a   :  { %v214_v19 = vmul.f32 0.0625, %v200_v18 }
 0x65c   :  { %v222_v20 = vadd.f32 1e-05, %v214_v19 }
 0x65e   :  { %1414 = vrsqrt.f32 %v222_v20 }
 0x66b   :  { %v1415_v34 = vpop.eup %1414 }
 0x66c   :  { %v238_v35 = vmul.f32 %v1415_v34, %v174_v55 }
 0x66e   :  { %v253_v38 = vmul.f32 %v1780_v47, %v238_v35 }
 0x670   :  { %v268_v41 = vadd.f32 %v1783_v52, %v253_v38 }
 0x68a   :  { %v533_v15 = vpop.permute.xlu0 %532 }
 0x68b   :  { %v535_v16 = vmul.f32 %v1411_v46, %v533_v15 }
 0x68d   :  { %v536_v17 = vpack.c.bf16 %v535_v16, %v535_v16 }
 0x68f   :  { %540 = vrot.lane.b32.xlu1 %v536_v17, %s1642_s30 }
 0x6d3   :  { %v203_v21 = vpop.xlane.xlu1 %202 }
 0x6d4   :  { %v215_v22 = vmul.f32 0.0625, %v203_v21 }
 0x6d6   :  { %v223_v23 = vadd.f32 1e-05, %v215_v22 }
 0x6d7   :  { %v206_v24 = vpop.xlane.xlu1 %205 }
 0x6d8   :  { %1416 = vrsqrt.f32 %v223_v23  ;;  %v216_v26 = vmul.f32 0.0625, %v206_v24 }
 0x6da   :  { %v224_v27 = vadd.f32 1e-05, %v216_v26 }
 0x6db   :  { %v209_v29 = vpop.xlane.xlu1 %208 }
 0x6dc   :  { %1418 = vrsqrt.f32 %v224_v27  ;;  %v217_v32 = vmul.f32 0.0625, %v209_v29 }
 0x6de   :  { %v225_v33 = vadd.f32 1e-05, %v217_v32 }
 0x6e0   :  { %1420 = vrsqrt.f32 %v225_v33 }
 0x6e5   :  { %v1417_v36 = vpop.eup %1416 }
 0x6e6   :  { %v239_v37 = vmul.f32 %v1417_v36, %v175_v7 }
 0x6e8   :  { %v254_v39 = vmul.f32 %v1780_v47, %v239_v37 }
 0x6e9   :  { %v1419_v40 = vpop.eup %1418 }
 0x6ea   :  { %v269_v42 = vadd.f32 %v1783_v52, %v254_v39  ;;  %v240_v43 = vmul.f32 %v1419_v40, %v176_v3 }
 0x6ec   :  { %v274_v44 = vpack.c.bf16 %v269_v42, %v268_v41  ;;  %v255_v48 = vmul.f32 %v1780_v47, %v240_v43 }
 0x6ed   :  { %v1421_v45 = vpop.eup %1420 }
 0x6ee   :  { %1276 = vmatprep.mubr.msk.bf16.mxu0 %vm136_vm0, %v274_v44  ;;  %v241_v46 = vmul.f32 %v1421_v45, %v177_v8  ;;  %v270_v50 = vadd.f32 %v1783_v52, %v255_v48 }
 0x6f0   :  { %v256_v49 = vmul.f32 %v1780_v47, %v241_v46 }
 0x6f2   :  { %v271_v51 = vadd.f32 %v1783_v52, %v256_v49 }
 0x6f4   :  { %v275_v53 = vpack.c.bf16 %v271_v51, %v270_v50 }
 0x6f6   :  { %1277 = vmatmul.mubr.msk.bf16.gmra.mxu0 %vm136_vm0, %v275_v53 }
 0x6f7   :  { %1300 = vmatprep.mubr.msk.bf16.mxu0 %vm1652_vm1, %v1651_v30 }
 0x701   :  { %v541_v54 = vpop.permute.xlu1 %540 }
 0x702   :  { %1301 = vmatmul.mubr.msk.bf16.vlgmr.msra.gmra.mxu0 %vm393_vm2, %v541_v54 }
 0x703   :  { %1313 = vmatpush3.bf16.msra.mxu0 %v1759_v28  ;;  %1316 = vmatprep.mubr.msk.bf16.mxu0 %vm1652_vm1, %v1651_v30 }
 0x704   :  { %1314 = vmatprep.subr.bf16.mxu0 %v1651_v30 }
 0x707   :  { %1315 = vmatpush3.bf16.msra.mxu0 %v1766_v31 }
 0x708   :  { %1328 = vmatprep.subr.bf16.mxu0 %v1651_v30 }
 0x7b6   :  { %v1852_v47 = vpop.f32.mrf.mxu0 }
 0x7b8   :  { %v1854_v52 = vpop.f32.mrf.mxu0 }
 0x7b9   :  { %v354_v39 = vadd.f32 %v1801_v6, %v1854_v52 }
 0x7ba   :  { %v1856_v55 = vpop.f32.mrf.mxu0 }
 0x7bc   :  { %v1858_v56 = vpop.f32.mrf.mxu0 }
 0x7c2   :  { %v579_v58 = vpop.f32.mrf.mxu0 }
 0x7c3   :  { %v585_v59 = vadd.f32 %v579_v58, %v346_v57 }
 0x7c4   :  { %v1302_v61 = vpop.f32.mrf.mxu0 }
 0x7c5   :  { %1422 = vtanh.f32 %v585_v59  ;;  %v1211_v1 = vmul.f32 -1.442695, %v585_v59 }
 0x7c6   :  { %v582_v62 = vpop.f32.mrf.mxu0 }
 0x7c7   :  { %1424 = vpow2.f32 %v1211_v1 }
 0x7c8   :  { %v1303_v63 = vpop.f32.mrf.mxu0 }
 0x7d2   :  { %v1423_v0 = vpop.eup %1422 }
 0x7d3   :  { %595 = vrot.lane.b32.xlu0 %v1423_v0, %s1654_s4  ;;  %v357_v0 = vadd.f32 %v1801_v6, %v1858_v56 }
 0x7d4   :  { %v1425_v2 = vpop.eup %1424 }
 0x7d5   :  { %v589_v3 = vadd.f32 1.0, %v1425_v2 }
 0x7d7   :  { %1426 = vrcp.f32 %v589_v3 }
 0x7e4   :  { %v1427_v4 = vpop.eup %1426 }
 0x7e5   :  { %v593_v5 = vmul.f32 %v1427_v4, %v1825_v60  ;;  %v349_v60 = vadd.f32 %v1815_v25, %v1801_v6 }
 0x845   :  { %v596_v7 = vpop.permute.xlu0 %595 }
 0x846   :  { %v598_v8 = vmul.f32 %v1427_v4, %v596_v7 }
 0x848   :  { %600 = vrot.lane.b32.xlu0 %v598_v8, %s1654_s4 }
 0x8ba   :  { %v601_v9 = vpop.permute.xlu0 %600 }
 0x8bb   :  { %v603_v10 = vadd.f32 %v601_v9, %v593_v5 }
 0x8bd   :  { %1428 = vtanh.f32 %v603_v10 }
 0x8ca   :  { %v1429_v11 = vpop.eup %1428 }
 0x8cb   :  { %606 = vrot.lane.b32.xlu0 %v1429_v11, %s1654_s4 }
 0x93d   :  { %v607_v12 = vpop.permute.xlu0 %606 }
 0x93e   :  { %v609_v13 = vmul.f32 %v1427_v4, %v607_v12 }
 0x940   :  { %v610_v14 = vpack.c.bf16 %v609_v13, %v609_v13 }
 0x942   :  { %614 = vrot.lane.b32.xlu1 %v610_v14, %s1642_s30 }
 0x9b4   :  { %v615_v15 = vpop.permute.xlu1 %614 }
 0x9b5   :  { %1309 = vmatmul.mubr.msk.bf16.vlgmr.msra.gmra.mxu1 %vm393_vm2, %v615_v15 }
 0x9b6   :  { %1321 = vmatpush3.bf16.msra.mxu1 %v1759_v28  ;;  %1324 = vmatprep.mubr.msk.bf16.mxu1 %vm1652_vm1, %v1651_v30 }
 0x9b7   :  { %1322 = vmatprep.subr.bf16.mxu1 %v1651_v30 }
 0x9ba   :  { %1323 = vmatpush3.bf16.msra.mxu1 %v1766_v31 }
 0x9bb   :  { %1336 = vmatprep.subr.bf16.mxu1 %v1651_v30 }
 0xa75   :  { %v653_v16 = vpop.f32.mrf.mxu1 }
 0xa76   :  { %v659_v17 = vadd.f32 %v653_v16, %v349_v60 }
 0xa77   :  { %v1310_v18 = vpop.f32.mrf.mxu1 }
 0xa78   :  { %1430 = vtanh.f32 %v659_v17  ;;  %v1213_v22 = vmul.f32 -1.442695, %v659_v17  ;;  %v362_v18 = vadd.f32 %v1852_v47, %v1801_v6 }
 0xa79   :  { %v656_v19 = vpop.f32.mrf.mxu1 }
 0xa7a   :  { %1432 = vpow2.f32 %v1213_v22 }
 0xa7b   :  { %v1311_v20 = vpop.f32.mrf.mxu1 }
 0xa85   :  { %v1431_v21 = vpop.eup %1430 }
 0xa86   :  { %669 = vrot.lane.b32.xlu0 %v1431_v21, %s1654_s4 }
 0xa87   :  { %v1433_v23 = vpop.eup %1432 }
 0xa88   :  { %v663_v24 = vadd.f32 1.0, %v1433_v23 }
 0xa8a   :  { %1434 = vrcp.f32 %v663_v24 }
 0xa97   :  { %v1435_v26 = vpop.eup %1434 }
 0xa98   :  { %v667_v25 = vmul.f32 %v1435_v26, %v603_v10 }
 0xaf8   :  { %v670_v27 = vpop.permute.xlu0 %669 }
 0xaf9   :  { %v672_v29 = vmul.f32 %v1435_v26, %v670_v27 }
 0xafb   :  { %674 = vrot.lane.b32.xlu1 %v672_v29, %s1654_s4 }
 0xb6d   :  { %v675_v32 = vpop.permute.xlu1 %674 }
 0xb6e   :  { %v677_v33 = vadd.f32 %v675_v32, %v667_v25 }
 0xb70   :  { %1436 = vtanh.f32 %v677_v33 }
 0xb7d   :  { %v1437_v34 = vpop.eup %1436 }
 0xb7e   :  { %680 = vrot.lane.b32.xlu0 %v1437_v34, %s1654_s4 }
 0xbf0   :  { %v681_v35 = vpop.permute.xlu0 %680 }
 0xbf1   :  { %v683_v36 = vmul.f32 %v1435_v26, %v681_v35 }
 0xbf3   :  { %v684_v37 = vpack.c.bf16 %v683_v36, %v683_v36 }
 0xbf5   :  { %688 = vrot.lane.b32.xlu1 %v684_v37, %s1642_s30 }
 0xc67   :  { %v689_v38 = vpop.permute.xlu1 %688 }
 0xc68   :  { %1317 = vmatmul.mubr.msk.bf16.vlgmr.msra.gmra.mxu0 %vm393_vm2, %v689_v38 }
 0xc69   :  { %1329 = vmatpush3.bf16.msra.mxu0 %v1759_v28  ;;  %1332 = vmatprep.mubr.msk.bf16.mxu0 %vm1652_vm1, %v1651_v30 }
 0xc6a   :  { %1330 = vmatprep.subr.bf16.mxu0 %v1651_v30 }
 0xc6d   :  { %1331 = vmatpush3.bf16.msra.mxu0 %v1766_v31 }
 0xc6e   :  { %1344 = vmatprep.subr.bf16.mxu0 %v1651_v30 }
 0xd28   :  { %v727_v40 = vpop.f32.mrf.mxu0 }
 0xd29   :  { %v733_v41 = vadd.f32 %v727_v40, %v354_v39 }
 0xd2a   :  { %v1318_v42 = vpop.f32.mrf.mxu0 }
 0xd2b   :  { %1438 = vtanh.f32 %v733_v41  ;;  %v1215_v46 = vmul.f32 -1.442695, %v733_v41  ;;  %v365_v41 = vadd.f32 %v1856_v55, %v1801_v6 }
 0xd2c   :  { %v730_v43 = vpop.f32.mrf.mxu0 }
 0xd2d   :  { %1440 = vpow2.f32 %v1215_v46 }
 0xd2e   :  { %v1319_v44 = vpop.f32.mrf.mxu0 }
 0xd38   :  { %v1439_v45 = vpop.eup %1438 }
 0xd39   :  { %743 = vrot.lane.b32.xlu0 %v1439_v45, %s1654_s4 }
 0xd3a   :  { %v1441_v48 = vpop.eup %1440 }
 0xd3b   :  { %v737_v49 = vadd.f32 1.0, %v1441_v48 }
 0xd3d   :  { %1442 = vrcp.f32 %v737_v49 }
 0xd4a   :  { %v1443_v50 = vpop.eup %1442 }
 0xd4b   :  { %v741_v54 = vmul.f32 %v1443_v50, %v677_v33 }
 0xdab   :  { %v744_v51 = vpop.permute.xlu0 %743 }
 0xdac   :  { %v746_v53 = vmul.f32 %v1443_v50, %v744_v51 }
 0xdae   :  { %748 = vrot.lane.b32.xlu1 %v746_v53, %s1654_s4 }
 0xe20   :  { %v749_v52 = vpop.permute.xlu1 %748 }
 0xe21   :  { %v751_v57 = vadd.f32 %v749_v52, %v741_v54 }
 0xe23   :  { %1444 = vtanh.f32 %v751_v57 }
 0xe30   :  { %v1445_v58 = vpop.eup %1444 }
 0xe31   :  { %754 = vrot.lane.b32.xlu0 %v1445_v58, %s1654_s4  ;;  %v1385_v58 = vld [vmem:[%s1959_s6 + $0x8] sm:$0xff]  }
 0xea3   :  { %v755_v59 = vpop.permute.xlu0 %754 }
 0xea4   :  { %v757_v61 = vmul.f32 %v1443_v50, %v755_v59  ;;  %v1386_v59 = vld [vmem:[%s1959_s6] sm:$0xff]  }
 0xea6   :  { %v758_v62 = vpack.c.bf16 %v757_v61, %v757_v61 }
 0xea8   :  { %762 = vrot.lane.b32.xlu1 %v758_v62, %s1642_s30  ;;  %v1387_v62 = vld [vmem:[%s1961_s8 + $0x8] sm:$0xff]  }
 0xf1a   :  { %v763_v63 = vpop.permute.xlu1 %762 }
 0xf1b   :  { %1325 = vmatmul.mubr.msk.bf16.vlgmr.msra.gmra.mxu1 %vm393_vm2, %v763_v63 }
 0xf1c   :  { %1337 = vmatpush3.bf16.msra.mxu1 %v1759_v28  ;;  %1340 = vmatprep.mubr.msk.bf16.mxu1 %vm1652_vm1, %v1651_v30 }
 0xf1d   :  { %1338 = vmatprep.subr.bf16.mxu1 %v1651_v30 }
 0xf20   :  { %1339 = vmatpush3.bf16.msra.mxu1 %v1766_v31 }
 0xf21   :  { %1352 = vmatprep.subr.bf16.mxu1 %v1651_v30 }
 0xfdb   :  { %v801_v1 = vpop.f32.mrf.mxu1 }
 0xfdc   :  { %v807_v2 = vadd.f32 %v801_v1, %v357_v0 }
 0xfdd   :  { %v1326_v3 = vpop.f32.mrf.mxu1 }
 0xfde   :  { %1446 = vtanh.f32 %v807_v2  ;;  %v1217_v28 = vmul.f32 -1.442695, %v807_v2  ;;  %v1388_v3 = vld [vmem:[%s1961_s8] sm:$0xff]  }
 0xfdf   :  { %v804_v4 = vpop.f32.mrf.mxu1 }
 0xfe0   :  { %1448 = vpow2.f32 %v1217_v28  ;;  %v1389_v4 = vld [vmem:[%s1963_s10] sm:$0xff]  }
 0xfe1   :  { %v1327_v7 = vpop.f32.mrf.mxu1 }
 0xfe2   :  { %v1222_v7 = vld [vmem:[#allocation12] ss:$0 sm:$0xff] }
 0xfeb   :  { %v1447_v8 = vpop.eup %1446 }
 0xfec   :  { %817 = vrot.lane.b32.xlu0 %v1447_v8, %s1654_s4 }
 0xfed   :  { %v1449_v5 = vpop.eup %1448 }
 0xfee   :  { %v811_v9 = vadd.f32 1.0, %v1449_v5 }
 0xff0   :  { %1450 = vrcp.f32 %v811_v9 }
 0xffd   :  { %v1451_v31 = vpop.eup %1450 }
 0xffe   :  { %v815_v56 = vmul.f32 %v1451_v31, %v751_v57 }
0x105e   :  { %v818_v10 = vpop.permute.xlu0 %817 }
0x105f   :  { %v820_v11 = vmul.f32 %v1451_v31, %v818_v10 }
0x1061   :  { %822 = vrot.lane.b32.xlu1 %v820_v11, %s1654_s4 }
0x10d3   :  { %v823_v12 = vpop.permute.xlu1 %822 }
0x10d4   :  { %v825_v13 = vadd.f32 %v823_v12, %v815_v56 }
0x10d6   :  { %1452 = vtanh.f32 %v825_v13 }
0x10e3   :  { %v1453_v14 = vpop.eup %1452 }
0x10e4   :  { %828 = vrot.lane.b32.xlu0 %v1453_v14, %s1654_s4 }
0x1156   :  { %v829_v15 = vpop.permute.xlu0 %828 }
0x1157   :  { %v831_v60 = vmul.f32 %v1451_v31, %v829_v15 }
0x1159   :  { %v832_v16 = vpack.c.bf16 %v831_v60, %v831_v60 }
0x115b   :  { %836 = vrot.lane.b32.xlu1 %v832_v16, %s1642_s30 }
0x11cd   :  { %v837_v17 = vpop.permute.xlu1 %836 }
0x11ce   :  { %1333 = vmatmul.mubr.msk.bf16.vlgmr.msra.gmra.mxu0 %vm393_vm2, %v837_v17  ;;  %v1230_v17 = vld [vmem:[%s1964_s11] ss:$0 sm:$0xff] }
0x11cf   :  { %1348 = vmatprep.mubr.msk.bf16.mxu0 %vm1652_vm1, %v1651_v30  ;;  %1345 = vmatpush3.bf16.msra.mxu0 %v1385_v58 }
0x11d0   :  { %1346 = vmatprep.subr.bf16.mxu0 %v1651_v30 }
0x11d3   :  { %1347 = vmatpush3.bf16.msra.mxu0 %v1386_v59 }
0x11d4   :  { %1360 = vmatprep.subr.bf16.mxu0 %v1651_v30 }
0x128e   :  { %v875_v19 = vpop.f32.mrf.mxu0 }
0x128f   :  { %v881_v20 = vadd.f32 %v875_v19, %v362_v18 }
0x1290   :  { %v1334_v21 = vpop.f32.mrf.mxu0 }
0x1291   :  { %1454 = vtanh.f32 %v881_v20  ;;  %v1219_v26 = vmul.f32 -1.442695, %v881_v20 }
0x1292   :  { %v878_v22 = vpop.f32.mrf.mxu0 }
0x1293   :  { %1456 = vpow2.f32 %v1219_v26 }
0x1294   :  { %v1335_v23 = vpop.f32.mrf.mxu0 }
0x129e   :  { %v1455_v24 = vpop.eup %1454 }
0x129f   :  { %891 = vrot.lane.b32.xlu0 %v1455_v24, %s1654_s4 }
0x12a0   :  { %v1457_v27 = vpop.eup %1456 }
0x12a1   :  { %v885_v29 = vadd.f32 1.0, %v1457_v27 }
0x12a3   :  { %1458 = vrcp.f32 %v885_v29 }
0x12b0   :  { %v1459_v25 = vpop.eup %1458 }
0x12b1   :  { %v889_v47 = vmul.f32 %v1459_v25, %v825_v13 }
0x1311   :  { %v892_v32 = vpop.permute.xlu0 %891 }
0x1312   :  { %v894_v33 = vmul.f32 %v1459_v25, %v892_v32 }
0x1314   :  { %896 = vrot.lane.b32.xlu1 %v894_v33, %s1654_s4 }
0x1386   :  { %v897_v34 = vpop.permute.xlu1 %896 }
0x1387   :  { %v899_v35 = vadd.f32 %v897_v34, %v889_v47 }
0x1389   :  { %1460 = vtanh.f32 %v899_v35 }
0x1396   :  { %v1461_v36 = vpop.eup %1460 }
0x1397   :  { %902 = vrot.lane.b32.xlu0 %v1461_v36, %s1654_s4 }
0x1409   :  { %v903_v37 = vpop.permute.xlu0 %902 }
0x140a   :  { %v905_v38 = vmul.f32 %v1459_v25, %v903_v37 }
0x140c   :  { %v906_v39 = vpack.c.bf16 %v905_v38, %v905_v38 }
0x140e   :  { %910 = vrot.lane.b32.xlu1 %v906_v39, %s1642_s30 }
0x1480   :  { %v911_v40 = vpop.permute.xlu1 %910 }
0x1481   :  { %1341 = vmatmul.mubr.msk.bf16.vlgmr.msra.gmra.mxu1 %vm393_vm2, %v911_v40 }
0x1482   :  { %1356 = vmatprep.mubr.msk.bf16.mxu1 %vm1652_vm1, %v1651_v30  ;;  %1353 = vmatpush3.bf16.msra.mxu1 %v1387_v62 }
0x1483   :  { %1354 = vmatprep.subr.bf16.mxu1 %v1651_v30 }
0x1486   :  { %1355 = vmatpush3.bf16.msra.mxu1 %v1388_v3 }
0x1541   :  { %v949_v42 = vpop.f32.mrf.mxu1 }
0x1542   :  { %v955_v43 = vadd.f32 %v949_v42, %v365_v41 }
0x1543   :  { %v1342_v44 = vpop.f32.mrf.mxu1 }
0x1544   :  { %1462 = vtanh.f32 %v955_v43  ;;  %v1221_v49 = vmul.f32 -1.442695, %v955_v43 }
0x1545   :  { %v952_v45 = vpop.f32.mrf.mxu1 }
0x1546   :  { %1464 = vpow2.f32 %v1221_v49 }
0x1547   :  { %v1343_v46 = vpop.f32.mrf.mxu1 }
0x1551   :  { %v1463_v48 = vpop.eup %1462 }
0x1552   :  { %965 = vrot.lane.b32.xlu0 %v1463_v48, %s1654_s4 }
0x1553   :  { %v1465_v50 = vpop.eup %1464 }
0x1554   :  { %v959_v51 = vadd.f32 1.0, %v1465_v50 }
0x1556   :  { %1466 = vrcp.f32 %v959_v51 }
0x1563   :  { %v1467_v53 = vpop.eup %1466 }
0x1564   :  { %v963_v6 = vmul.f32 %v1467_v53, %v899_v35 }
0x15c4   :  { %v966_v54 = vpop.permute.xlu0 %965 }
0x15c5   :  { %v968_v52 = vmul.f32 %v1467_v53, %v966_v54 }
0x15c7   :  { %970 = vrot.lane.b32.xlu1 %v968_v52, %s1654_s4 }
0x1639   :  { %v971_v55 = vpop.permute.xlu1 %970 }
0x163a   :  { %v973_v57 = vadd.f32 %v971_v55, %v963_v6 }
0x163c   :  { %1468 = vtanh.f32 %v973_v57 }
0x1649   :  { %v1469_v61 = vpop.eup %1468 }
0x164a   :  { %976 = vrot.lane.b32.xlu0 %v1469_v61, %s1654_s4 }
0x16bc   :  { %v977_v63 = vpop.permute.xlu0 %976 }
0x16bd   :  { %v979_v0 = vmul.f32 %v1467_v53, %v977_v63 }
0x16bf   :  { %v980_v1 = vpack.c.bf16 %v979_v0, %v979_v0 }
0x16c1   :  { %993 = vrot.lane.b32.xlu1 %v980_v1, %s1642_s30  ;;  %s1655_s30 = smov [#allocation15]  }
0x16c2   :  { %s1185_s16 = sshll.u32 %s1655_s30, 4  ;;  %s1186_s16 = int_to_ptr.vmem [resolvable:$true] %s1185_s16 }
0x16c3   :  { %s1610_s17 = scalar_lea.vmem %s1186_s16, 128  ;;  %p1615_p8 = scmp.lt.s32.totalorder %s1186_s16, %s1186_s16 }
0x16c4   :  { %p1611_p7 = scmp.ne.s32.totalorder %s1186_s16, %s1610_s17  ;;  %p1616_p9 = scmp.lt.s32.totalorder %s1610_s17, %s1610_s17 }
0x16c6   :  { %p1617_p10 = por %p1616_p9, %p1615_p8 }
0x16c8   :  { %p1618_p11 = pnand %p1617_p10, %p1611_p7 }
0x1733   :  { %v994_v2 = vpop.permute.xlu1 %993 }
0x1734   :  { %1349 = vmatmul.mubr.msk.bf16.vlgmr.msra.gmra.mxu0 %vm393_vm2, %v994_v2 }
0x1735   :  { %1362 = vmatprep.mubr.msk.bf16.mxu0 %vm1652_vm1, %v1651_v30  ;;  %1361 = vmatpush3.bf16.msra.mxu0 %v1389_v4  ;;  %v1226_v30 = vld [vmem:[#allocation14] ss:$0 sm:$0xff] }
0x17f4   :  { %v1044_v8 = vpop.f32.mrf.mxu0 }
0x17f5   :  { %v1045_v28 = vadd.f32 %v1222_v7, %v1044_v8 }
0x17f6   :  { %v1350_v5 = vpop.f32.mrf.mxu0 }
0x17f7   :  { %v1050_v9 = vmax.f32 %v1045_v28, 0.0 }
0x17f8   :  { %v1047_v31 = vpop.f32.mrf.mxu0 }
0x17f9   :  { %v1051_v10 = vpack.c.bf16 %v1050_v9, %v1050_v9 }
0x17fa   :  { %v1351_v11 = vpop.f32.mrf.mxu0 }
0x17fb   :  { %1357 = vmatmul.mubr.msk.bf16.vlgmr.msra.gmra.mxu1 %vm393_vm2, %v1051_v10 }
0x18bb   :  { %v1112_v56 = vpop.f32.mrf.mxu1 }
0x18bc   :  { %v1113_v12 = vadd.f32 %v1226_v30, %v1112_v56 }
0x18bd   :  { %v1358_v13 = vpop.f32.mrf.mxu1 }
0x18be   :  { %v1118_v14 = vmax.f32 %v1113_v12, 0.0 }
0x18bf   :  { %v1115_v15 = vpop.f32.mrf.mxu1 }
0x18c0   :  { %v1119_v60 = vpack.c.bf16 %v1118_v14, %v1118_v14 }
0x18c1   :  { %v1359_v16 = vpop.f32.mrf.mxu1 }
0x18c2   :  { %1363 = vmatmul.mubr.msk.bf16.vlgmr.msra.gmra.mxu0 %vm136_vm0, %v1119_v60 }
0x1982   :  { %v1172_v18 = vpop.f32.mrf.mxu0 }
0x1983   :  { %v1173_v19 = vadd.f32 %v1230_v17, %v1172_v18 }
0x1984   :  { %v1364_v20 = vpop.f32.mrf.mxu0 }
0x1985   :  { %1178 = vst [vmem:[#allocation15] sm:$0xff] %v1173_v19 }
0x1986   :  { %v1175_v21 = vpop.f32.mrf.mxu0 }
0x1987   :  { %1621 = shalt.err (!%p1618_p11)
}
0x1988   :  { %1188 = dma.vmem_to_hbm [thread:$0]  %s1186_s16, 128, %s1965_s12, [#allocation5]   ;;  %v1365_v22 = vpop.f32.mrf.mxu0 }
0x1989   :  { %1638 = dma.done.wait [#allocation5], 128  }
0x198a   :  { %1639 = vsyncadd [#allocation5], 4294967168 }
0x198b   :  { %1192 = vsyncpa [#allocation4], 1 }
0x198c   :  { %1193 = vsyncpa [#allocation7], 1 }
0x198d   :  { %1194 = vsyncpa [#allocation10], 1 }
0x198e   :  { %1195 = vsyncpa [#allocation13], 1 }
0x198f   :  { %1196 = vsyncpa [#allocation5], 1 }

</bundles_post_ra>
